<compile_context>
chip_gen: v5e
topology: v5e:2x2
jax: 0.10.0
libtpu: 0.0.40
codegen_flags: <defaults>
</compile_context>

<pallas_src>
import math

import jax
import jax.numpy as jnp
from jax.experimental import pallas as pl
from jax.experimental.pallas import tpu as pltpu

LN_EPS = 1e-5
LANE = 128
NEG_BIG = -1e30  # logit for the padded 8th class -> softmax prob exactly 0


def _round_up(n, m=LANE):
    return ((n + m - 1) // m) * m


def _vec_layout(dim):
    """(offset, size) of every 1-row parameter inside the packed (1, N) f32 buffer.
    Every segment starts at a 128-lane-aligned offset."""
    segs = [
        ("rn_g", dim), ("rn_b", dim),
        ("rn_b1", dim // 2), ("rn_b2", dim // 4), ("rn_b3", 64),
        ("rn_w4", 64), ("rn_b4", 1),
        ("u_bcat", 3 * dim),
        ("c_b1", 32), ("c_b2", 16), ("c_w3", 16), ("c_b3", 1),
        ("fr_g", dim), ("fr_b", dim), ("fr_b1", 2 * dim), ("fr_b2", dim),
    ]
    layout, off = {}, 0
    for name, n in segs:
        layout[name] = (off, n)
        off += _round_up(n)
    return layout, off


def _gelu(x):
    # TODO(synk): PyTorch nn.GELU defaults to exact erf; tanh approximation used
    # since erf lowering is not guaranteed in the Mosaic backend.
    c = jnp.float32(math.sqrt(2.0 / math.pi))
    return 0.5 * x * (1.0 + jnp.tanh(c * (x + 0.044715 * x * x * x)))


def _sigmoid(x):
    return pl.reciprocal(1.0 + jnp.exp(-x), approx=True)


def _layernorm(x, gamma, beta):
    mu = jnp.mean(x, axis=-1, keepdims=True)
    var = jnp.mean((x - mu) ** 2, axis=-1, keepdims=True)
    return (x - mu) * jax.lax.rsqrt(var + LN_EPS) * gamma + beta


def _make_kernel(dim, vec_layout):
    d2 = dim // 2
    # column offsets inside the concatenated (dim, d2 + 5*dim) bf16 weight
    c_rn1 = 0
    c_unc = d2
    c_fr1 = d2 + 3 * dim

    def kernel(feat_ref, pred_ref, wD_ref, w_rn2_ref, w_rn3_ref, w_fr2_ref,
               mat_ref, vec_ref, out_feat_ref, out_rel_ref):
        def vec(name):
            off, n = vec_layout[name]
            return vec_ref[:, off:off + n]                     # (1, n) f32 row

        def mm(act, w):                                        # bf16 x bf16 -> f32
            return jnp.dot(act.astype(jnp.bfloat16), w,
                           preferred_element_type=jnp.float32)

        x = feat_ref[...]                                      # (TB, dim) f32

        # ---- reliability_net (Dropout = identity in eval mode) ----
        h = _layernorm(x, vec("rn_g"), vec("rn_b"))
        h = _gelu(mm(h, wD_ref[:, c_rn1:c_rn1 + d2]) + vec("rn_b1"))
        h = _gelu(mm(h, w_rn2_ref[...]) + vec("rn_b2"))
        h = _gelu(mm(h, w_rn3_ref[...]) + vec("rn_b3"))
        # final 64 -> 1 projection on the VPU (multiply + lane reduce), no MXU
        rel_logit = jnp.sum(h * vec("rn_w4"), axis=-1, keepdims=True) + vec("rn_b4")
        reliability = _sigmoid(rel_logit)                      # (TB, 1)

        # ---- uncertainty: 3 Linear(dim,dim) fused into one (dim, 3*dim) matmul ----
        u = _gelu(mm(x, wD_ref[:, c_unc:c_unc + 3 * dim]) + vec("u_bcat"))

        def uvar(lo):                                          # unbiased var (dim-1)
            ui = u[:, lo:lo + dim]
            mu = jnp.mean(ui, axis=-1, keepdims=True)
            return jnp.sum((ui - mu) ** 2, axis=-1, keepdims=True) * (1.0 / (dim - 1))

        uncertainty = (uvar(0) + uvar(dim) + uvar(2 * dim)) * (1.0 / 3.0)

        # ---- confidence estimator on softmax(pred); pred is padded to 8 logits
        #      with -1e30 so the 8th probability is exactly 0 (zero weight row) ----
        p = pred_ref[...]                                      # (TB, 8) f32
        p = p - jnp.max(p, axis=-1, keepdims=True)
        e = jnp.exp(p)
        probs = e * pl.reciprocal(jnp.sum(e, axis=-1, keepdims=True), approx=True)
        c = jnp.dot(probs, mat_ref[0:8, 0:32], preferred_element_type=jnp.float32)
        c = jnp.maximum(c + vec("c_b1"), 0.0)
        c = jnp.dot(c, mat_ref[:, 128:144], preferred_element_type=jnp.float32)
        c = jnp.maximum(c + vec("c_b2"), 0.0)
        conf_logit = jnp.sum(c * vec("c_w3"), axis=-1, keepdims=True) + vec("c_b3")
        confidence = _sigmoid(conf_logit)                      # (TB, 1)

        combined = 0.4 * reliability + 0.3 * confidence + 0.3 * (1.0 - uncertainty)
        final_rel = jnp.clip(combined, 0.1, 0.95)              # (TB, 1)

        # ---- feature refiner ----
        r = _layernorm(x, vec("fr_g"), vec("fr_b"))
        r = _gelu(mm(r, wD_ref[:, c_fr1:c_fr1 + 2 * dim]) + vec("fr_b1"))
        refined = mm(r, w_fr2_ref[...]) + vec("fr_b2")         # (TB, dim)

        # final = x + 0.1*(w*refined + (1-w)*x), algebraically folded;
        # w is (TB,1) and broadcasts implicitly (no explicit broadcast_to).
        w01 = 0.1 * final_rel
        out_feat_ref[...] = x * (1.1 - w01) + refined * w01
        out_rel_ref[...] = final_rel

    return kernel


def init_params(key, dim):
    """Raw per-layer params matching the PyTorch module.
    Linear weights: xavier_uniform(gain=0.1), built directly in (in, out) layout;
    biases zero; LayerNorm gamma=1, beta=0."""
    d2, d4 = dim // 2, dim // 4
    keys = iter(jax.random.split(key, 16))

    def xavier(fan_in, fan_out, gain=0.1):
        bound = gain * math.sqrt(6.0 / (fan_in + fan_out))
        return jax.random.uniform(next(keys), (fan_in, fan_out), jnp.float32,
                                  -bound, bound)

    z = lambda n: jnp.zeros((n,), jnp.float32)
    return dict(
        rn_g=jnp.ones((dim,), jnp.float32), rn_b=z(dim),
        rn_w1=xavier(dim, d2), rn_b1=z(d2),
        rn_w2=xavier(d2, d4), rn_b2=z(d4),
        rn_w3=xavier(d4, 64), rn_b3=z(64),
        rn_w4=xavier(64, 1), rn_b4=z(1),
        u_w0=xavier(dim, dim), u_b0=z(dim),
        u_w1=xavier(dim, dim), u_b1=z(dim),
        u_w2=xavier(dim, dim), u_b2=z(dim),
        c_w1=xavier(7, 32), c_b1=z(32),
        c_w2=xavier(32, 16), c_b2=z(16),
        c_w3=xavier(16, 1), c_b3=z(1),
        fr_g=jnp.ones((dim,), jnp.float32), fr_b=z(dim),
        fr_w1=xavier(dim, 2 * dim), fr_b1=z(2 * dim),
        fr_w2=xavier(2 * dim, dim), fr_b2=z(dim),
    )


def pack_params(raw, dim):
    """One-time packing of the module parameters into 6 kernel inputs:
       wD (bf16, D-row weights concatenated), w_rn2/w_rn3/w_fr2 (bf16),
       mat (f32, tiny confidence weights), vec (f32, all 1-row params)."""
    layout, total = _vec_layout(dim)

    vec = jnp.zeros((1, total), jnp.float32)

    def put(buf, name, arr):
        off, n = layout[name]
        return buf.at[0, off:off + n].set(jnp.asarray(arr, jnp.float32).reshape(-1))

    vec = put(vec, "rn_g", raw["rn_g"]);   vec = put(vec, "rn_b", raw["rn_b"])
    vec = put(vec, "rn_b1", raw["rn_b1"]); vec = put(vec, "rn_b2", raw["rn_b2"])
    vec = put(vec, "rn_b3", raw["rn_b3"]); vec = put(vec, "rn_w4", raw["rn_w4"])
    vec = put(vec, "rn_b4", raw["rn_b4"])
    vec = put(vec, "u_bcat",
              jnp.concatenate([raw["u_b0"], raw["u_b1"], raw["u_b2"]], axis=-1))
    vec = put(vec, "c_b1", raw["c_b1"]);   vec = put(vec, "c_b2", raw["c_b2"])
    vec = put(vec, "c_w3", raw["c_w3"]);   vec = put(vec, "c_b3", raw["c_b3"])
    vec = put(vec, "fr_g", raw["fr_g"]);   vec = put(vec, "fr_b", raw["fr_b"])
    vec = put(vec, "fr_b1", raw["fr_b1"]); vec = put(vec, "fr_b2", raw["fr_b2"])

    mat = jnp.zeros((32, 256), jnp.float32)
    mat = mat.at[0:7, 0:32].set(raw["c_w1"])      # row 7 stays zero (padded class)
    mat = mat.at[0:32, 128:144].set(raw["c_w2"])

    u_wcat = jnp.concatenate([raw["u_w0"], raw["u_w1"], raw["u_w2"]], axis=1)
    wD = jnp.concatenate([raw["rn_w1"], u_wcat, raw["fr_w1"]],
                         axis=1).astype(jnp.bfloat16)          # (dim, dim//2 + 5*dim)
    return dict(
        wD=wD,
        w_rn2=raw["rn_w2"].astype(jnp.bfloat16),
        w_rn3=raw["rn_w3"].astype(jnp.bfloat16),
        w_fr2=raw["fr_w2"].astype(jnp.bfloat16),
        mat=mat, vec=vec, layout=layout,
    )


def reliability_forward(features, predictions, packed, dim):
    B, D = features.shape
    assert D == dim and dim % 256 == 0
    # Batch tile: full batch for small B, 256 rows otherwise (fills the MXU M dim).
    TB = B if B <= 256 else 256
    assert B % TB == 0 and TB % 8 == 0
    grid = (B // TB,)

    # Pad predictions to 8 classes with a huge negative logit -> prob 8 is exactly 0.
    pred8 = jnp.pad(predictions.astype(jnp.float32), ((0, 0), (0, 1)),
                    constant_values=NEG_BIG)

    kernel = _make_kernel(dim, packed["layout"])

    def batch_spec(ncols):
        return pl.BlockSpec((TB, ncols), lambda i: (i, 0))

    def full_spec(arr):
        return pl.BlockSpec(arr.shape, lambda i: (0, 0))

    d2, d4 = dim // 2, dim // 4
    flops = int(2 * B * (dim * d2 + d2 * d4 + d4 * 64 + 3 * dim * dim
                         + 8 * 32 + 32 * 16 + dim * 2 * dim + 2 * dim * dim))
    trans = int(B * (d2 + d4 + 64 + 3 * dim + 2 * dim + 8 + 4))
    bytes_acc = int((features.size + pred8.size + 2 * features.size + B) * 4
                    + sum(int(packed[k].size) * packed[k].dtype.itemsize
                          for k in ("wD", "w_rn2", "w_rn3", "w_fr2", "mat", "vec")))

    out_feat, out_rel = pl.pallas_call(
        kernel,
        out_shape=(
            jax.ShapeDtypeStruct((B, dim), jnp.float32),
            jax.ShapeDtypeStruct((B, 1), jnp.float32),
        ),
        grid=grid,
        in_specs=[
            batch_spec(dim),                 # features        (blocked over batch)
            batch_spec(8),                   # padded predictions
            full_spec(packed["wD"]),         # bf16: rn_w1 | u_wcat | fr_w1
            full_spec(packed["w_rn2"]),      # bf16
            full_spec(packed["w_rn3"]),      # bf16
            full_spec(packed["w_fr2"]),      # bf16
            full_spec(packed["mat"]),        # f32 tiny confidence weights
            full_spec(packed["vec"]),        # f32 packed biases / LN / row weights
        ],
        out_specs=(batch_spec(dim), pl.BlockSpec((TB, 1), lambda i: (i, 0))),
        compiler_params=pltpu.CompilerParams(dimension_semantics=("parallel",)),
        cost_estimate=pl.CostEstimate(flops=flops, transcendentals=trans,
                                      bytes_accessed=bytes_acc),
    )(features, pred8, packed["wD"], packed["w_rn2"], packed["w_rn3"],
      packed["w_fr2"], packed["mat"], packed["vec"])

    # torch returns final_reliability.squeeze(1)
    return out_feat, out_rel[:, 0]


if __name__ == "__main__":
    key = jax.random.PRNGKey(0)
    dim, batch, n_classes = 256, 8, 7   # confidence_estimator hardcodes 7 classes
    k_feat, k_pred, k_params = jax.random.split(key, 3)

    features = jax.random.normal(k_feat, (batch, dim), jnp.float32)
    predictions = jax.random.normal(k_pred, (batch, n_classes), jnp.float32)

    raw = init_params(k_params, dim)
    packed = pack_params(raw, dim)      # one-time packing (not per forward call)

    final_features, final_reliability = reliability_forward(
        features, predictions, packed, dim)
    jax.block_until_ready((final_features, final_reliability))

    assert final_features.shape == (batch, dim)
    assert final_reliability.shape == (batch,)
    assert bool(jnp.all(jnp.isfinite(final_features)))
    assert bool(jnp.all(final_reliability >= 0.1)) and bool(jnp.all(final_reliability <= 0.95))
    print("KERNEL_OK")
</pallas_src>

<mosaic_0001>
module attributes {stable_mosaic.version = 11 : i64} {
  func.func @kernel(%arg0: i32, %arg1: memref<8x256xf32, #tpu.memory_space<vmem>>, %arg2: memref<8x8xf32, #tpu.memory_space<vmem>>, %arg3: memref<256x1408xbf16, #tpu.memory_space<vmem>>, %arg4: memref<128x64xbf16, #tpu.memory_space<vmem>>, %arg5: memref<64x64xbf16, #tpu.memory_space<vmem>>, %arg6: memref<512x256xbf16, #tpu.memory_space<vmem>>, %arg7: memref<32x256xf32, #tpu.memory_space<vmem>>, %arg8: memref<1x3712xf32, #tpu.memory_space<vmem>>, %arg9: memref<8x256xf32, #tpu.memory_space<vmem>>, %arg10: memref<8x1xf32, #tpu.memory_space<vmem>>) attributes {dimension_semantics = [#tpu.dimension_semantics<parallel>], iteration_bounds = array<i64: 1>, scalar_prefetch = 0 : i64, scratch_operands = 0 : i64, tpu.core_type = #tpu.core_type<tc>, window_params = [{transform_indices = @transform_0, window_bounds = array<i64: 8, 256>}, {transform_indices = @transform_1, window_bounds = array<i64: 8, 8>}, {pipeline_mode = #tpu.pipeline_mode<synchronous>, transform_indices = @transform_2, window_bounds = array<i64: 256, 1408>}, {pipeline_mode = #tpu.pipeline_mode<synchronous>, transform_indices = @transform_3, window_bounds = array<i64: 128, 64>}, {pipeline_mode = #tpu.pipeline_mode<synchronous>, transform_indices = @transform_4, window_bounds = array<i64: 64, 64>}, {pipeline_mode = #tpu.pipeline_mode<synchronous>, transform_indices = @transform_5, window_bounds = array<i64: 512, 256>}, {pipeline_mode = #tpu.pipeline_mode<synchronous>, transform_indices = @transform_6, window_bounds = array<i64: 32, 256>}, {pipeline_mode = #tpu.pipeline_mode<synchronous>, transform_indices = @transform_7, window_bounds = array<i64: 1, 3712>}, {transform_indices = @transform_8, window_bounds = array<i64: 8, 256>}, {transform_indices = @transform_9, window_bounds = array<i64: 8, 1>}]} {
    %c0 = arith.constant 0 : index
    %c0_0 = arith.constant 0 : index
    %0 = vector.load %arg1[%c0, %c0_0] : memref<8x256xf32, #tpu.memory_space<vmem>>, vector<8x256xf32>
    %c0_1 = arith.constant 0 : index
    %c0_2 = arith.constant 0 : index
    %1 = vector.load %arg8[%c0_1, %c0_2] : memref<1x3712xf32, #tpu.memory_space<vmem>>, vector<1x256xf32>
    %c0_3 = arith.constant 0 : index
    %c256 = arith.constant 256 : index
    %2 = vector.load %arg8[%c0_3, %c256] : memref<1x3712xf32, #tpu.memory_space<vmem>>, vector<1x256xf32>
    %cst = arith.constant dense<0.000000e+00> : vector<8xf32>
    %3 = vector.multi_reduction <add>, %0, %cst [1] : vector<8x256xf32> to vector<8xf32>
    %4 = vector.shape_cast %3 : vector<8xf32> to vector<8x1xf32>
    %cst_4 = arith.constant 2.560000e+02 : f32
    %5 = vector.broadcast %cst_4 : f32 to vector<8x1xf32>
    %6 = arith.divf %4, %5 : vector<8x1xf32>
    %7 = vector.broadcast %6 : vector<8x1xf32> to vector<8x256xf32>
    %8 = arith.subf %0, %7 : vector<8x256xf32>
    %9 = arith.mulf %8, %8 : vector<8x256xf32>
    %cst_5 = arith.constant dense<0.000000e+00> : vector<8xf32>
    %10 = vector.multi_reduction <add>, %9, %cst_5 [1] : vector<8x256xf32> to vector<8xf32>
    %11 = vector.shape_cast %10 : vector<8xf32> to vector<8x1xf32>
    %cst_6 = arith.constant 2.560000e+02 : f32
    %12 = vector.broadcast %cst_6 : f32 to vector<8x1xf32>
    %13 = arith.divf %11, %12 : vector<8x1xf32>
    %14 = vector.broadcast %6 : vector<8x1xf32> to vector<8x256xf32>
    %15 = arith.subf %0, %14 : vector<8x256xf32>
    %cst_7 = arith.constant 9.99999974E-6 : f32
    %16 = vector.broadcast %cst_7 : f32 to vector<8x1xf32>
    %17 = arith.addf %13, %16 : vector<8x1xf32>
    %18 = math.rsqrt %17 : vector<8x1xf32>
    %19 = vector.broadcast %18 : vector<8x1xf32> to vector<8x256xf32>
    %20 = arith.mulf %15, %19 : vector<8x256xf32>
    %21 = vector.broadcast %1 : vector<1x256xf32> to vector<8x256xf32>
    %22 = arith.mulf %20, %21 : vector<8x256xf32>
    %23 = vector.broadcast %2 : vector<1x256xf32> to vector<8x256xf32>
    %24 = arith.addf %22, %23 : vector<8x256xf32>
    %c0_8 = arith.constant 0 : index
    %c0_9 = arith.constant 0 : index
    %25 = vector.load %arg3[%c0_8, %c0_9] : memref<256x1408xbf16, #tpu.memory_space<vmem>>, vector<256x128xbf16>
    %26 = arith.truncf %24 : vector<8x256xf32> to vector<8x256xbf16>
    %cst_10 = arith.constant dense<0.000000e+00> : vector<8x128xf32>
    %27 = tpu.matmul %26, %25, %cst_10 {dimension_numbers = #tpu.dot_dimension_numbers<[1], [0], [0], [1], [0, 0, 1, 1], [], []>} : vector<8x256xbf16>, vector<256x128xbf16>, vector<8x128xf32> -> vector<8x128xf32>
    %c0_11 = arith.constant 0 : index
    %c512 = arith.constant 512 : index
    %28 = vector.load %arg8[%c0_11, %c512] : memref<1x3712xf32, #tpu.memory_space<vmem>>, vector<1x128xf32>
    %29 = vector.broadcast %28 : vector<1x128xf32> to vector<8x128xf32>
    %30 = arith.addf %27, %29 : vector<8x128xf32>
    %cst_12 = arith.constant 5.000000e-01 : f32
    %31 = vector.broadcast %cst_12 : f32 to vector<8x128xf32>
    %32 = arith.mulf %31, %30 : vector<8x128xf32>
    %cst_13 = arith.constant 4.471500e-02 : f32
    %33 = vector.broadcast %cst_13 : f32 to vector<8x128xf32>
    %34 = arith.mulf %33, %30 : vector<8x128xf32>
    %35 = arith.mulf %34, %30 : vector<8x128xf32>
    %36 = arith.mulf %35, %30 : vector<8x128xf32>
    %37 = arith.addf %30, %36 : vector<8x128xf32>
    %cst_14 = arith.constant 0.797884583 : f32
    %38 = vector.broadcast %cst_14 : f32 to vector<8x128xf32>
    %39 = arith.mulf %38, %37 : vector<8x128xf32>
    %40 = math.tanh %39 : vector<8x128xf32>
    %cst_15 = arith.constant 1.000000e+00 : f32
    %41 = vector.broadcast %cst_15 : f32 to vector<8x128xf32>
    %42 = arith.addf %41, %40 : vector<8x128xf32>
    %43 = arith.mulf %32, %42 : vector<8x128xf32>
    %c0_16 = arith.constant 0 : index
    %c0_17 = arith.constant 0 : index
    %44 = vector.load %arg4[%c0_16, %c0_17] : memref<128x64xbf16, #tpu.memory_space<vmem>>, vector<128x64xbf16>
    %45 = arith.truncf %43 : vector<8x128xf32> to vector<8x128xbf16>
    %cst_18 = arith.constant dense<0.000000e+00> : vector<8x64xf32>
    %46 = tpu.matmul %45, %44, %cst_18 {dimension_numbers = #tpu.dot_dimension_numbers<[1], [0], [0], [1], [0, 0, 1, 1], [], []>} : vector<8x128xbf16>, vector<128x64xbf16>, vector<8x64xf32> -> vector<8x64xf32>
    %c0_19 = arith.constant 0 : index
    %c640 = arith.constant 640 : index
    %47 = vector.load %arg8[%c0_19, %c640] : memref<1x3712xf32, #tpu.memory_space<vmem>>, vector<1x64xf32>
    %48 = vector.broadcast %47 : vector<1x64xf32> to vector<8x64xf32>
    %49 = arith.addf %46, %48 : vector<8x64xf32>
    %cst_20 = arith.constant 5.000000e-01 : f32
    %50 = vector.broadcast %cst_20 : f32 to vector<8x64xf32>
    %51 = arith.mulf %50, %49 : vector<8x64xf32>
    %cst_21 = arith.constant 4.471500e-02 : f32
    %52 = vector.broadcast %cst_21 : f32 to vector<8x64xf32>
    %53 = arith.mulf %52, %49 : vector<8x64xf32>
    %54 = arith.mulf %53, %49 : vector<8x64xf32>
    %55 = arith.mulf %54, %49 : vector<8x64xf32>
    %56 = arith.addf %49, %55 : vector<8x64xf32>
    %cst_22 = arith.constant 0.797884583 : f32
    %57 = vector.broadcast %cst_22 : f32 to vector<8x64xf32>
    %58 = arith.mulf %57, %56 : vector<8x64xf32>
    %59 = math.tanh %58 : vector<8x64xf32>
    %cst_23 = arith.constant 1.000000e+00 : f32
    %60 = vector.broadcast %cst_23 : f32 to vector<8x64xf32>
    %61 = arith.addf %60, %59 : vector<8x64xf32>
    %62 = arith.mulf %51, %61 : vector<8x64xf32>
    %c0_24 = arith.constant 0 : index
    %c0_25 = arith.constant 0 : index
    %63 = vector.load %arg5[%c0_24, %c0_25] : memref<64x64xbf16, #tpu.memory_space<vmem>>, vector<64x64xbf16>
    %64 = arith.truncf %62 : vector<8x64xf32> to vector<8x64xbf16>
    %cst_26 = arith.constant dense<0.000000e+00> : vector<8x64xf32>
    %65 = tpu.matmul %64, %63, %cst_26 {dimension_numbers = #tpu.dot_dimension_numbers<[1], [0], [0], [1], [0, 0, 1, 1], [], []>} : vector<8x64xbf16>, vector<64x64xbf16>, vector<8x64xf32> -> vector<8x64xf32>
    %c0_27 = arith.constant 0 : index
    %c768 = arith.constant 768 : index
    %66 = vector.load %arg8[%c0_27, %c768] : memref<1x3712xf32, #tpu.memory_space<vmem>>, vector<1x64xf32>
    %67 = vector.broadcast %66 : vector<1x64xf32> to vector<8x64xf32>
    %68 = arith.addf %65, %67 : vector<8x64xf32>
    %cst_28 = arith.constant 5.000000e-01 : f32
    %69 = vector.broadcast %cst_28 : f32 to vector<8x64xf32>
    %70 = arith.mulf %69, %68 : vector<8x64xf32>
    %cst_29 = arith.constant 4.471500e-02 : f32
    %71 = vector.broadcast %cst_29 : f32 to vector<8x64xf32>
    %72 = arith.mulf %71, %68 : vector<8x64xf32>
    %73 = arith.mulf %72, %68 : vector<8x64xf32>
    %74 = arith.mulf %73, %68 : vector<8x64xf32>
    %75 = arith.addf %68, %74 : vector<8x64xf32>
    %cst_30 = arith.constant 0.797884583 : f32
    %76 = vector.broadcast %cst_30 : f32 to vector<8x64xf32>
    %77 = arith.mulf %76, %75 : vector<8x64xf32>
    %78 = math.tanh %77 : vector<8x64xf32>
    %cst_31 = arith.constant 1.000000e+00 : f32
    %79 = vector.broadcast %cst_31 : f32 to vector<8x64xf32>
    %80 = arith.addf %79, %78 : vector<8x64xf32>
    %81 = arith.mulf %70, %80 : vector<8x64xf32>
    %c0_32 = arith.constant 0 : index
    %c896 = arith.constant 896 : index
    %82 = vector.load %arg8[%c0_32, %c896] : memref<1x3712xf32, #tpu.memory_space<vmem>>, vector<1x64xf32>
    %83 = vector.broadcast %82 : vector<1x64xf32> to vector<8x64xf32>
    %84 = arith.mulf %81, %83 : vector<8x64xf32>
    %cst_33 = arith.constant dense<0.000000e+00> : vector<8xf32>
    %85 = vector.multi_reduction <add>, %84, %cst_33 [1] : vector<8x64xf32> to vector<8xf32>
    %86 = vector.shape_cast %85 : vector<8xf32> to vector<8x1xf32>
    %c0_34 = arith.constant 0 : index
    %c1024 = arith.constant 1024 : index
    %87 = vector.load %arg8[%c0_34, %c1024] : memref<1x3712xf32, #tpu.memory_space<vmem>>, vector<1x1xf32>
    %88 = vector.broadcast %87 : vector<1x1xf32> to vector<8x1xf32>
    %89 = arith.addf %86, %88 : vector<8x1xf32>
    %cst_35 = arith.constant 0.000000e+00 : f32
    %90 = vector.broadcast %cst_35 : f32 to vector<8x1xf32>
    %91 = arith.subf %90, %89 : vector<8x1xf32>
    %92 = math.exp %91 : vector<8x1xf32>
    %cst_36 = arith.constant 1.000000e+00 : f32
    %93 = vector.broadcast %cst_36 : f32 to vector<8x1xf32>
    %94 = arith.addf %93, %92 : vector<8x1xf32>
    %95 = tpu.reciprocal %94 {approx = true} : vector<8x1xf32> -> vector<8x1xf32>
    %c0_37 = arith.constant 0 : index
    %c128 = arith.constant 128 : index
    %96 = vector.load %arg3[%c0_37, %c128] : memref<256x1408xbf16, #tpu.memory_space<vmem>>, vector<256x768xbf16>
    %97 = arith.truncf %0 : vector<8x256xf32> to vector<8x256xbf16>
    %cst_38 = arith.constant dense<0.000000e+00> : vector<8x768xf32>
    %98 = tpu.matmul %97, %96, %cst_38 {dimension_numbers = #tpu.dot_dimension_numbers<[1], [0], [0], [1], [0, 0, 1, 1], [], []>} : vector<8x256xbf16>, vector<256x768xbf16>, vector<8x768xf32> -> vector<8x768xf32>
    %c0_39 = arith.constant 0 : index
    %c1152 = arith.constant 1152 : index
    %99 = vector.load %arg8[%c0_39, %c1152] : memref<1x3712xf32, #tpu.memory_space<vmem>>, vector<1x768xf32>
    %100 = vector.broadcast %99 : vector<1x768xf32> to vector<8x768xf32>
    %101 = arith.addf %98, %100 : vector<8x768xf32>
    %cst_40 = arith.constant 5.000000e-01 : f32
    %102 = vector.broadcast %cst_40 : f32 to vector<8x768xf32>
    %103 = arith.mulf %102, %101 : vector<8x768xf32>
    %cst_41 = arith.constant 4.471500e-02 : f32
    %104 = vector.broadcast %cst_41 : f32 to vector<8x768xf32>
    %105 = arith.mulf %104, %101 : vector<8x768xf32>
    %106 = arith.mulf %105, %101 : vector<8x768xf32>
    %107 = arith.mulf %106, %101 : vector<8x768xf32>
    %108 = arith.addf %101, %107 : vector<8x768xf32>
    %cst_42 = arith.constant 0.797884583 : f32
    %109 = vector.broadcast %cst_42 : f32 to vector<8x768xf32>
    %110 = arith.mulf %109, %108 : vector<8x768xf32>
    %111 = math.tanh %110 : vector<8x768xf32>
    %cst_43 = arith.constant 1.000000e+00 : f32
    %112 = vector.broadcast %cst_43 : f32 to vector<8x768xf32>
    %113 = arith.addf %112, %111 : vector<8x768xf32>
    %114 = arith.mulf %103, %113 : vector<8x768xf32>
    %115 = vector.extract_strided_slice %114 {offsets = [0, 0], sizes = [8, 256], strides = [1, 1]} : vector<8x768xf32> to vector<8x256xf32>
    %cst_44 = arith.constant dense<0.000000e+00> : vector<8xf32>
    %116 = vector.multi_reduction <add>, %115, %cst_44 [1] : vector<8x256xf32> to vector<8xf32>
    %117 = vector.shape_cast %116 : vector<8xf32> to vector<8x1xf32>
    %cst_45 = arith.constant 2.560000e+02 : f32
    %118 = vector.broadcast %cst_45 : f32 to vector<8x1xf32>
    %119 = arith.divf %117, %118 : vector<8x1xf32>
    %120 = vector.broadcast %119 : vector<8x1xf32> to vector<8x256xf32>
    %121 = arith.subf %115, %120 : vector<8x256xf32>
    %122 = arith.mulf %121, %121 : vector<8x256xf32>
    %cst_46 = arith.constant dense<0.000000e+00> : vector<8xf32>
    %123 = vector.multi_reduction <add>, %122, %cst_46 [1] : vector<8x256xf32> to vector<8xf32>
    %124 = vector.shape_cast %123 : vector<8xf32> to vector<8x1xf32>
    %cst_47 = arith.constant 0.00392156886 : f32
    %125 = vector.broadcast %cst_47 : f32 to vector<8x1xf32>
    %126 = arith.mulf %124, %125 : vector<8x1xf32>
    %127 = vector.extract_strided_slice %114 {offsets = [0, 256], sizes = [8, 256], strides = [1, 1]} : vector<8x768xf32> to vector<8x256xf32>
    %cst_48 = arith.constant dense<0.000000e+00> : vector<8xf32>
    %128 = vector.multi_reduction <add>, %127, %cst_48 [1] : vector<8x256xf32> to vector<8xf32>
    %129 = vector.shape_cast %128 : vector<8xf32> to vector<8x1xf32>
    %cst_49 = arith.constant 2.560000e+02 : f32
    %130 = vector.broadcast %cst_49 : f32 to vector<8x1xf32>
    %131 = arith.divf %129, %130 : vector<8x1xf32>
    %132 = vector.broadcast %131 : vector<8x1xf32> to vector<8x256xf32>
    %133 = arith.subf %127, %132 : vector<8x256xf32>
    %134 = arith.mulf %133, %133 : vector<8x256xf32>
    %cst_50 = arith.constant dense<0.000000e+00> : vector<8xf32>
    %135 = vector.multi_reduction <add>, %134, %cst_50 [1] : vector<8x256xf32> to vector<8xf32>
    %136 = vector.shape_cast %135 : vector<8xf32> to vector<8x1xf32>
    %cst_51 = arith.constant 0.00392156886 : f32
    %137 = vector.broadcast %cst_51 : f32 to vector<8x1xf32>
    %138 = arith.mulf %136, %137 : vector<8x1xf32>
    %139 = arith.addf %126, %138 : vector<8x1xf32>
    %140 = vector.extract_strided_slice %114 {offsets = [0, 512], sizes = [8, 256], strides = [1, 1]} : vector<8x768xf32> to vector<8x256xf32>
    %cst_52 = arith.constant dense<0.000000e+00> : vector<8xf32>
    %141 = vector.multi_reduction <add>, %140, %cst_52 [1] : vector<8x256xf32> to vector<8xf32>
    %142 = vector.shape_cast %141 : vector<8xf32> to vector<8x1xf32>
    %cst_53 = arith.constant 2.560000e+02 : f32
    %143 = vector.broadcast %cst_53 : f32 to vector<8x1xf32>
    %144 = arith.divf %142, %143 : vector<8x1xf32>
    %145 = vector.broadcast %144 : vector<8x1xf32> to vector<8x256xf32>
    %146 = arith.subf %140, %145 : vector<8x256xf32>
    %147 = arith.mulf %146, %146 : vector<8x256xf32>
    %cst_54 = arith.constant dense<0.000000e+00> : vector<8xf32>
    %148 = vector.multi_reduction <add>, %147, %cst_54 [1] : vector<8x256xf32> to vector<8xf32>
    %149 = vector.shape_cast %148 : vector<8xf32> to vector<8x1xf32>
    %cst_55 = arith.constant 0.00392156886 : f32
    %150 = vector.broadcast %cst_55 : f32 to vector<8x1xf32>
    %151 = arith.mulf %149, %150 : vector<8x1xf32>
    %152 = arith.addf %139, %151 : vector<8x1xf32>
    %cst_56 = arith.constant 0.333333343 : f32
    %153 = vector.broadcast %cst_56 : f32 to vector<8x1xf32>
    %154 = arith.mulf %152, %153 : vector<8x1xf32>
    %c0_57 = arith.constant 0 : index
    %c0_58 = arith.constant 0 : index
    %155 = vector.load %arg2[%c0_57, %c0_58] : memref<8x8xf32, #tpu.memory_space<vmem>>, vector<8x8xf32>
    %cst_59 = arith.constant dense<0xFF800000> : vector<8xf32>
    %156 = vector.multi_reduction <maximumf>, %155, %cst_59 [1] : vector<8x8xf32> to vector<8xf32>
    %157 = vector.shape_cast %156 : vector<8xf32> to vector<8x1xf32>
    %158 = vector.broadcast %157 : vector<8x1xf32> to vector<8x8xf32>
    %159 = arith.subf %155, %158 : vector<8x8xf32>
    %160 = math.exp %159 : vector<8x8xf32>
    %cst_60 = arith.constant dense<0.000000e+00> : vector<8xf32>
    %161 = vector.multi_reduction <add>, %160, %cst_60 [1] : vector<8x8xf32> to vector<8xf32>
    %162 = vector.shape_cast %161 : vector<8xf32> to vector<8x1xf32>
    %163 = tpu.reciprocal %162 {approx = true} : vector<8x1xf32> -> vector<8x1xf32>
    %164 = vector.broadcast %163 : vector<8x1xf32> to vector<8x8xf32>
    %165 = arith.mulf %160, %164 : vector<8x8xf32>
    %c0_61 = arith.constant 0 : index
    %c0_62 = arith.constant 0 : index
    %166 = vector.load %arg7[%c0_61, %c0_62] : memref<32x256xf32, #tpu.memory_space<vmem>>, vector<8x32xf32>
    %cst_63 = arith.constant dense<0.000000e+00> : vector<8x32xf32>
    %167 = tpu.matmul %165, %166, %cst_63 {dimension_numbers = #tpu.dot_dimension_numbers<[1], [0], [0], [1], [0, 0, 1, 1], [], []>} : vector<8x8xf32>, vector<8x32xf32>, vector<8x32xf32> -> vector<8x32xf32>
    %c0_64 = arith.constant 0 : index
    %c1920 = arith.constant 1920 : index
    %168 = vector.load %arg8[%c0_64, %c1920] : memref<1x3712xf32, #tpu.memory_space<vmem>>, vector<1x32xf32>
    %169 = vector.broadcast %168 : vector<1x32xf32> to vector<8x32xf32>
    %170 = arith.addf %167, %169 : vector<8x32xf32>
    %cst_65 = arith.constant 0.000000e+00 : f32
    %171 = vector.broadcast %cst_65 : f32 to vector<8x32xf32>
    %172 = arith.maximumf %170, %171 : vector<8x32xf32>
    %c0_66 = arith.constant 0 : index
    %c128_67 = arith.constant 128 : index
    %173 = vector.load %arg7[%c0_66, %c128_67] : memref<32x256xf32, #tpu.memory_space<vmem>>, vector<32x16xf32>
    %cst_68 = arith.constant dense<0.000000e+00> : vector<8x16xf32>
    %174 = tpu.matmul %172, %173, %cst_68 {dimension_numbers = #tpu.dot_dimension_numbers<[1], [0], [0], [1], [0, 0, 1, 1], [], []>} : vector<8x32xf32>, vector<32x16xf32>, vector<8x16xf32> -> vector<8x16xf32>
    %c0_69 = arith.constant 0 : index
    %c2048 = arith.constant 2048 : index
    %175 = vector.load %arg8[%c0_69, %c2048] : memref<1x3712xf32, #tpu.memory_space<vmem>>, vector<1x16xf32>
    %176 = vector.broadcast %175 : vector<1x16xf32> to vector<8x16xf32>
    %177 = arith.addf %174, %176 : vector<8x16xf32>
    %cst_70 = arith.constant 0.000000e+00 : f32
    %178 = vector.broadcast %cst_70 : f32 to vector<8x16xf32>
    %179 = arith.maximumf %177, %178 : vector<8x16xf32>
    %c0_71 = arith.constant 0 : index
    %c2176 = arith.constant 2176 : index
    %180 = vector.load %arg8[%c0_71, %c2176] : memref<1x3712xf32, #tpu.memory_space<vmem>>, vector<1x16xf32>
    %181 = vector.broadcast %180 : vector<1x16xf32> to vector<8x16xf32>
    %182 = arith.mulf %179, %181 : vector<8x16xf32>
    %cst_72 = arith.constant dense<0.000000e+00> : vector<8xf32>
    %183 = vector.multi_reduction <add>, %182, %cst_72 [1] : vector<8x16xf32> to vector<8xf32>
    %184 = vector.shape_cast %183 : vector<8xf32> to vector<8x1xf32>
    %c0_73 = arith.constant 0 : index
    %c2304 = arith.constant 2304 : index
    %185 = vector.load %arg8[%c0_73, %c2304] : memref<1x3712xf32, #tpu.memory_space<vmem>>, vector<1x1xf32>
    %186 = vector.broadcast %185 : vector<1x1xf32> to vector<8x1xf32>
    %187 = arith.addf %184, %186 : vector<8x1xf32>
    %cst_74 = arith.constant 0.000000e+00 : f32
    %188 = vector.broadcast %cst_74 : f32 to vector<8x1xf32>
    %189 = arith.subf %188, %187 : vector<8x1xf32>
    %190 = math.exp %189 : vector<8x1xf32>
    %cst_75 = arith.constant 1.000000e+00 : f32
    %191 = vector.broadcast %cst_75 : f32 to vector<8x1xf32>
    %192 = arith.addf %191, %190 : vector<8x1xf32>
    %193 = tpu.reciprocal %192 {approx = true} : vector<8x1xf32> -> vector<8x1xf32>
    %cst_76 = arith.constant 4.000000e-01 : f32
    %194 = vector.broadcast %cst_76 : f32 to vector<8x1xf32>
    %195 = arith.mulf %194, %95 : vector<8x1xf32>
    %cst_77 = arith.constant 3.000000e-01 : f32
    %196 = vector.broadcast %cst_77 : f32 to vector<8x1xf32>
    %197 = arith.mulf %196, %193 : vector<8x1xf32>
    %198 = arith.addf %195, %197 : vector<8x1xf32>
    %cst_78 = arith.constant 1.000000e+00 : f32
    %199 = vector.broadcast %cst_78 : f32 to vector<8x1xf32>
    %200 = arith.subf %199, %154 : vector<8x1xf32>
    %cst_79 = arith.constant 3.000000e-01 : f32
    %201 = vector.broadcast %cst_79 : f32 to vector<8x1xf32>
    %202 = arith.mulf %201, %200 : vector<8x1xf32>
    %203 = arith.addf %198, %202 : vector<8x1xf32>
    %cst_80 = arith.constant 1.000000e-01 : f32
    %cst_81 = arith.constant 0.949999988 : f32
    %204 = vector.broadcast %cst_80 : f32 to vector<8x1xf32>
    %205 = arith.maximumf %204, %203 : vector<8x1xf32>
    %206 = vector.broadcast %cst_81 : f32 to vector<8x1xf32>
    %207 = arith.minimumf %206, %205 : vector<8x1xf32>
    %c0_82 = arith.constant 0 : index
    %c2432 = arith.constant 2432 : index
    %208 = vector.load %arg8[%c0_82, %c2432] : memref<1x3712xf32, #tpu.memory_space<vmem>>, vector<1x256xf32>
    %c0_83 = arith.constant 0 : index
    %c2688 = arith.constant 2688 : index
    %209 = vector.load %arg8[%c0_83, %c2688] : memref<1x3712xf32, #tpu.memory_space<vmem>>, vector<1x256xf32>
    %cst_84 = arith.constant dense<0.000000e+00> : vector<8xf32>
    %210 = vector.multi_reduction <add>, %0, %cst_84 [1] : vector<8x256xf32> to vector<8xf32>
    %211 = vector.shape_cast %210 : vector<8xf32> to vector<8x1xf32>
    %cst_85 = arith.constant 2.560000e+02 : f32
    %212 = vector.broadcast %cst_85 : f32 to vector<8x1xf32>
    %213 = arith.divf %211, %212 : vector<8x1xf32>
    %214 = vector.broadcast %213 : vector<8x1xf32> to vector<8x256xf32>
    %215 = arith.subf %0, %214 : vector<8x256xf32>
    %216 = arith.mulf %215, %215 : vector<8x256xf32>
    %cst_86 = arith.constant dense<0.000000e+00> : vector<8xf32>
    %217 = vector.multi_reduction <add>, %216, %cst_86 [1] : vector<8x256xf32> to vector<8xf32>
    %218 = vector.shape_cast %217 : vector<8xf32> to vector<8x1xf32>
    %cst_87 = arith.constant 2.560000e+02 : f32
    %219 = vector.broadcast %cst_87 : f32 to vector<8x1xf32>
    %220 = arith.divf %218, %219 : vector<8x1xf32>
    %221 = vector.broadcast %213 : vector<8x1xf32> to vector<8x256xf32>
    %222 = arith.subf %0, %221 : vector<8x256xf32>
    %cst_88 = arith.constant 9.99999974E-6 : f32
    %223 = vector.broadcast %cst_88 : f32 to vector<8x1xf32>
    %224 = arith.addf %220, %223 : vector<8x1xf32>
    %225 = math.rsqrt %224 : vector<8x1xf32>
    %226 = vector.broadcast %225 : vector<8x1xf32> to vector<8x256xf32>
    %227 = arith.mulf %222, %226 : vector<8x256xf32>
    %228 = vector.broadcast %208 : vector<1x256xf32> to vector<8x256xf32>
    %229 = arith.mulf %227, %228 : vector<8x256xf32>
    %230 = vector.broadcast %209 : vector<1x256xf32> to vector<8x256xf32>
    %231 = arith.addf %229, %230 : vector<8x256xf32>
    %c0_89 = arith.constant 0 : index
    %c896_90 = arith.constant 896 : index
    %232 = vector.load %arg3[%c0_89, %c896_90] : memref<256x1408xbf16, #tpu.memory_space<vmem>>, vector<256x512xbf16>
    %233 = arith.truncf %231 : vector<8x256xf32> to vector<8x256xbf16>
    %cst_91 = arith.constant dense<0.000000e+00> : vector<8x512xf32>
    %234 = tpu.matmul %233, %232, %cst_91 {dimension_numbers = #tpu.dot_dimension_numbers<[1], [0], [0], [1], [0, 0, 1, 1], [], []>} : vector<8x256xbf16>, vector<256x512xbf16>, vector<8x512xf32> -> vector<8x512xf32>
    %c0_92 = arith.constant 0 : index
    %c2944 = arith.constant 2944 : index
    %235 = vector.load %arg8[%c0_92, %c2944] : memref<1x3712xf32, #tpu.memory_space<vmem>>, vector<1x512xf32>
    %236 = vector.broadcast %235 : vector<1x512xf32> to vector<8x512xf32>
    %237 = arith.addf %234, %236 : vector<8x512xf32>
    %cst_93 = arith.constant 5.000000e-01 : f32
    %238 = vector.broadcast %cst_93 : f32 to vector<8x512xf32>
    %239 = arith.mulf %238, %237 : vector<8x512xf32>
    %cst_94 = arith.constant 4.471500e-02 : f32
    %240 = vector.broadcast %cst_94 : f32 to vector<8x512xf32>
    %241 = arith.mulf %240, %237 : vector<8x512xf32>
    %242 = arith.mulf %241, %237 : vector<8x512xf32>
    %243 = arith.mulf %242, %237 : vector<8x512xf32>
    %244 = arith.addf %237, %243 : vector<8x512xf32>
    %cst_95 = arith.constant 0.797884583 : f32
    %245 = vector.broadcast %cst_95 : f32 to vector<8x512xf32>
    %246 = arith.mulf %245, %244 : vector<8x512xf32>
    %247 = math.tanh %246 : vector<8x512xf32>
    %cst_96 = arith.constant 1.000000e+00 : f32
    %248 = vector.broadcast %cst_96 : f32 to vector<8x512xf32>
    %249 = arith.addf %248, %247 : vector<8x512xf32>
    %250 = arith.mulf %239, %249 : vector<8x512xf32>
    %c0_97 = arith.constant 0 : index
    %c0_98 = arith.constant 0 : index
    %251 = vector.load %arg6[%c0_97, %c0_98] : memref<512x256xbf16, #tpu.memory_space<vmem>>, vector<512x256xbf16>
    %252 = arith.truncf %250 : vector<8x512xf32> to vector<8x512xbf16>
    %cst_99 = arith.constant dense<0.000000e+00> : vector<8x256xf32>
    %253 = tpu.matmul %252, %251, %cst_99 {dimension_numbers = #tpu.dot_dimension_numbers<[1], [0], [0], [1], [0, 0, 1, 1], [], []>} : vector<8x512xbf16>, vector<512x256xbf16>, vector<8x256xf32> -> vector<8x256xf32>
    %c0_100 = arith.constant 0 : index
    %c3456 = arith.constant 3456 : index
    %254 = vector.load %arg8[%c0_100, %c3456] : memref<1x3712xf32, #tpu.memory_space<vmem>>, vector<1x256xf32>
    %255 = vector.broadcast %254 : vector<1x256xf32> to vector<8x256xf32>
    %256 = arith.addf %253, %255 : vector<8x256xf32>
    %cst_101 = arith.constant 1.000000e-01 : f32
    %257 = vector.broadcast %cst_101 : f32 to vector<8x1xf32>
    %258 = arith.mulf %257, %207 : vector<8x1xf32>
    %cst_102 = arith.constant 1.100000e+00 : f32
    %259 = vector.broadcast %cst_102 : f32 to vector<8x1xf32>
    %260 = arith.subf %259, %258 : vector<8x1xf32>
    %261 = vector.broadcast %260 : vector<8x1xf32> to vector<8x256xf32>
    %262 = arith.mulf %0, %261 : vector<8x256xf32>
    %263 = vector.broadcast %258 : vector<8x1xf32> to vector<8x256xf32>
    %264 = arith.mulf %256, %263 : vector<8x256xf32>
    %265 = arith.addf %262, %264 : vector<8x256xf32>
    %c0_103 = arith.constant 0 : index
    %c0_104 = arith.constant 0 : index
    %266 = vector.load %arg9[%c0_103, %c0_104] : memref<8x256xf32, #tpu.memory_space<vmem>>, vector<8x256xf32>
    tpu.vector_store %arg9[%c0_103, %c0_104], %265 {strides = array<i32>} : memref<8x256xf32, #tpu.memory_space<vmem>>, vector<8x256xf32>,
    %c0_105 = arith.constant 0 : index
    %c0_106 = arith.constant 0 : index
    %267 = vector.load %arg10[%c0_105, %c0_106] : memref<8x1xf32, #tpu.memory_space<vmem>>, vector<8x1xf32>
    tpu.vector_store %arg10[%c0_105, %c0_106], %207 {strides = array<i32>} : memref<8x1xf32, #tpu.memory_space<vmem>>, vector<8x1xf32>,
    return
  }
  func.func @transform_0(%arg0: i32) -> (i32, i32) {
    %c0_i32 = arith.constant 0 : i32
    %c0_i32_0 = arith.constant 0 : i32
    return %arg0, %c0_i32 : i32, i32
  }
  func.func @transform_1(%arg0: i32) -> (i32, i32) {
    %c0_i32 = arith.constant 0 : i32
    %c0_i32_0 = arith.constant 0 : i32
    return %arg0, %c0_i32 : i32, i32
  }
  func.func @transform_2(%arg0: i32) -> (i32, i32) {
    %c0_i32 = arith.constant 0 : i32
    %c0_i32_0 = arith.constant 0 : i32
    %c0_i32_1 = arith.constant 0 : i32
    return %c0_i32, %c0_i32_0 : i32, i32
  }
  func.func @transform_3(%arg0: i32) -> (i32, i32) {
    %c0_i32 = arith.constant 0 : i32
    %c0_i32_0 = arith.constant 0 : i32
    %c0_i32_1 = arith.constant 0 : i32
    return %c0_i32, %c0_i32_0 : i32, i32
  }
  func.func @transform_4(%arg0: i32) -> (i32, i32) {
    %c0_i32 = arith.constant 0 : i32
    %c0_i32_0 = arith.constant 0 : i32
    %c0_i32_1 = arith.constant 0 : i32
    return %c0_i32, %c0_i32_0 : i32, i32
  }
  func.func @transform_5(%arg0: i32) -> (i32, i32) {
    %c0_i32 = arith.constant 0 : i32
    %c0_i32_0 = arith.constant 0 : i32
    %c0_i32_1 = arith.constant 0 : i32
    return %c0_i32, %c0_i32_0 : i32, i32
  }
  func.func @transform_6(%arg0: i32) -> (i32, i32) {
    %c0_i32 = arith.constant 0 : i32
    %c0_i32_0 = arith.constant 0 : i32
    %c0_i32_1 = arith.constant 0 : i32
    return %c0_i32, %c0_i32_0 : i32, i32
  }
  func.func @transform_7(%arg0: i32) -> (i32, i32) {
    %c0_i32 = arith.constant 0 : i32
    %c0_i32_0 = arith.constant 0 : i32
    %c0_i32_1 = arith.constant 0 : i32
    return %c0_i32, %c0_i32_0 : i32, i32
  }
  func.func @transform_8(%arg0: i32) -> (i32, i32) {
    %c0_i32 = arith.constant 0 : i32
    %c0_i32_0 = arith.constant 0 : i32
    return %arg0, %c0_i32 : i32, i32
  }
  func.func @transform_9(%arg0: i32) -> (i32, i32) {
    %c0_i32 = arith.constant 0 : i32
    %c0_i32_0 = arith.constant 0 : i32
    return %arg0, %c0_i32 : i32, i32
  }
}

</mosaic_0001>

<bundles_post_ra>
// kernel: tpu_custom_call.1
= control target key start
LH: loop header
LB: loop body
LE: loop exit
PB: predicated region body
PF: predicated region fallthrough
CT: control target
= control target key end

     0   :  { %15 = vsyncpa [#allocation3], 0  ;;  %s4337_s0 = inlined_call_operand.hbm [shape: f32[8,256], index: 0, kind: input, shape index: {}]   ;;  %s4338_s1 = inlined_call_operand.hbm [shape: f32[8,8], index: 1, kind: input, shape index: {}]   ;;  %s4339_s2 = inlined_call_operand.hbm [shape: bf16[256,1408], index: 2, kind: input, shape index: {}]   ;;  %s4340_s3 = inlined_call_operand.vmem [shape: bf16[128,64], index: 3, kind: input, shape index: {}]   ;;  %s4341_s4 = inlined_call_operand.vmem [shape: bf16[64,64], index: 4, kind: input, shape index: {}]   ;;  %s4342_s5 = inlined_call_operand.hbm [shape: bf16[512,256], index: 5, kind: input, shape index: {}]   ;;  %s4343_s6 = inlined_call_operand.vmem [shape: f32[32,256], index: 6, kind: input, shape index: {}]   ;;  %s4344_s7 = inlined_call_operand.hbm [shape: f32[1,3712], index: 7, kind: input, shape index: {}]   ;;  %s4345_s8 = inlined_call_operand.hbm [shape: f32[8,256], index: 8, kind: output, shape index: {0}]   ;;  %s4346_s9 = inlined_call_operand.vmem [shape: f32[8,1], index: 9, kind: output, shape index: {1}]  }
   0x1   :  { %16 = vsyncpa [#allocation6], 0 }
   0x2   :  { %17 = vsyncpa [#allocation9], 0  ;;  %s35_s11 = sshll.u32 %s4338_s1, 4  ;;  %s36_s11 = int_to_ptr.hbm [resolvable:$true] %s35_s11 }
   0x3   :  { %18 = vsyncpa [#allocation4], 0  ;;  %s4017_s12 = smov [#allocation5]   ;;  %s62_s16 = sshll.u32 %s4342_s5, 4  ;;  %s63_s16 = int_to_ptr.hbm [resolvable:$true] %s62_s16 }
   0x4   :  { %s37_s13 = sshll.u32 %s4017_s12, 4  ;;  %s4018_s17 = smov [#allocation8]   ;;  %s38_s13 = int_to_ptr.vmem [resolvable:$true] %s37_s13 }
   0x5   :  { %40 = dma.hbm_to_vmem [thread:$0]  %s36_s11, 128, %s38_s13, [#allocation6]  }
   0x6   :  { %s64_s18 = sshll.u32 %s4018_s17, 4  ;;  %s4019_s19 = smov 128   ;;  %s65_s18 = int_to_ptr.vmem [resolvable:$true] %s64_s18 }
   0x7   :  { %s4020_s20 = smov 8   ;;  %s24_s1 = sshll.u32 %s4337_s0, 4  ;;  %s25_s1 = int_to_ptr.hbm [resolvable:$true] %s24_s1 }
   0x8   :  { %70 = dma.hbm_to_vmem [thread:$0]  %s63_s16, 8192, %s65_s18, [#allocation9], %s4019_s19, %s4019_s19, %s4020_s20  }
   0x9   :  { %s4021_s23 = smov [#allocation2]   ;;  %s45_s5 = sshll.u32 %s4339_s2, 4  ;;  %s46_s5 = int_to_ptr.hbm [resolvable:$true] %s45_s5 }
   0xa   :  { %s26_s24 = sshll.u32 %s4021_s23, 4  ;;  %s4022_s27 = smov [#allocation7]   ;;  %s27_s24 = int_to_ptr.vmem [resolvable:$true] %s26_s24 }
   0xb   :  { %29 = dma.hbm_to_vmem [thread:$0]  %s25_s1, 256, %s27_s24, [#allocation3]  }
   0xc   :  { %s47_s28 = sshll.u32 %s4022_s27, 4  ;;  %s4023_s29 = smov 704   ;;  %s48_s28 = int_to_ptr.vmem [resolvable:$true] %s47_s28 }
   0xd   :  { %s4024_s30 = smov 44   ;;  %s78_s0 = sshll.u32 %s4344_s7, 4  ;;  %s79_s0 = int_to_ptr.hbm [resolvable:$true] %s78_s0 }
   0xe   :  { %53 = dma.hbm_to_vmem [thread:$0]  %s46_s5, 22528, %s48_s28, [#allocation6], %s4023_s29, %s4023_s29, %s4024_s30  }
   0xf   :  { %s4025_s12 = smov [#allocation10]  }
  0x10   :  { %s80_s13 = sshll.u32 %s4025_s12, 4  ;;  %s81_s13 = int_to_ptr.vmem [resolvable:$true] %s80_s13 }
  0x11   :  { %83 = dma.hbm_to_vmem [thread:$0]  %s79_s0, 464, %s81_s13, [#allocation9]  }
  0x12   :  { %4009 = dma.done.wait [#allocation3], 256  }
  0x13   :  { %4010 = vsyncadd [#allocation3], 4294967040 }
  0x14   :  { %4011 = dma.done.wait [#allocation6], 22656  }
  0x15   :  { %4012 = vsyncadd [#allocation6], 4294944640 }
  0x16   :  { %4013 = dma.done.wait [#allocation9], 8656  }
  0x17   :  { %4014 = vsyncadd [#allocation9], 4294958640  ;;  %v4094_v0 = vld [vmem:[#allocation2] sm:$0xff]  ;;  %v4096_v1 = vld [vmem:[#allocation2 + $0x8] sm:$0xff]  ;;  %v4026_v3 = vmov 256.0   ;;  %vm1338_vm1 = vcmask 64512  }
  0x18   :  { %v109_v2 = vadd.f32 %v4096_v1, %v4094_v0  ;;  %3820 = vrcp.f32 %v4026_v3  ;;  %v2564_v4 = vld [vmem:[#allocation7 + $0x268] sm:$0xf]  ;;  %v3552_v5 = vld [vmem:[#allocation7 + $0x290] sm:$0xf0]  ;;  %v2560_v9 = vld [vmem:[#allocation7 + $0x210] sm:$0xf] }
  0x19   :  { %v2596_v6 = vld [vmem:[#allocation7 + $0x528] sm:$0xf]  ;;  %v2565_v7 = vor.u32 %v3552_v5, %v2564_v4  ;;  %v3560_v8 = vld [vmem:[#allocation7 + $0x550] sm:$0xf0]  ;;  %v3551_v10 = vld [vmem:[#allocation7 + $0x238] sm:$0xf0] }
  0x1a   :  { %110 = vadd.xlane.f32.xlu0 %v109_v2  ;;  %v2597_v12 = vor.u32 %v3560_v8, %v2596_v6  ;;  %v2592_v13 = vld [vmem:[#allocation7 + $0x4d0] sm:$0xf]  ;;  %v3559_v14 = vld [vmem:[#allocation7 + $0x4f8] sm:$0xf0]  ;;  %v2561_v15 = vor.u32 %v3551_v10, %v2560_v9  ;;  %v2556_v17 = vld [vmem:[#allocation7 + $0x1b8] sm:$0xf] }
  0x1b   :  { %289 = vmatpush.bf16.msra.mxu0 %v2565_v7  ;;  %v2593_v16 = vor.u32 %v3559_v14, %v2592_v13  ;;  %v3550_v18 = vld [vmem:[#allocation7 + $0x1e0] sm:$0xf0]  ;;  %v2588_v20 = vld [vmem:[#allocation7 + $0x478] sm:$0xf]  ;;  %v2552_v24 = vld [vmem:[#allocation7 + $0x160] sm:$0xf] }
  0x1c   :  { %302 = vmatpush.bf16.msra.mxu1 %v2597_v12  ;;  %v3558_v21 = vld [vmem:[#allocation7 + $0x4a0] sm:$0xf0]  ;;  %v2557_v22 = vor.u32 %v3550_v18, %v2556_v17  ;;  %v3549_v25 = vld [vmem:[#allocation7 + $0x188] sm:$0xf0]  ;;  %v2584_v27 = vld [vmem:[#allocation7 + $0x420] sm:$0xf] }
  0x1d   :  { %v2589_v23 = vor.u32 %v3558_v21, %v2588_v20  ;;  %v3557_v28 = vld [vmem:[#allocation7 + $0x448] sm:$0xf0]  ;;  %v2553_v29 = vor.u32 %v3549_v25, %v2552_v24  ;;  %v2548_v31 = vld [vmem:[#allocation7 + $0x108] sm:$0xf]  ;;  %v3548_v32 = vld [vmem:[#allocation7 + $0x130] sm:$0xf0] }
  0x1e   :  { %v3821_v11 = vpop.eup %3820  ;;  %v2585_v30 = vor.u32 %v3557_v28, %v2584_v27  ;;  %v2580_v34 = vld [vmem:[#allocation7 + $0x3c8] sm:$0xf]  ;;  %v3556_v35 = vld [vmem:[#allocation7 + $0x3f0] sm:$0xf0]  ;;  %v2549_v36 = vor.u32 %v3548_v32, %v2548_v31  ;;  %v2544_v38 = vld [vmem:[#allocation7 + $0xb0] sm:$0xf] }
  0x1f   :  { %v113_v19 = vmul.f32 256.0, %v3821_v11  ;;  %290 = vmatpush.bf16.msra.mxu0 %v2561_v15  ;;  %v2581_v37 = vor.u32 %v3556_v35, %v2580_v34  ;;  %v3547_v39 = vld [vmem:[#allocation7 + $0xd8] sm:$0xf0]  ;;  %v2576_v41 = vld [vmem:[#allocation7 + $0x370] sm:$0xf]  ;;  %vm117_vm0 = vweird.f32 %v3821_v11  ;;  %vm452_vm5 = vcmask 523264  }
  0x20   :  { %303 = vmatpush.bf16.msra.mxu1 %v2593_v16  ;;  %v3555_v42 = vld [vmem:[#allocation7 + $0x398] sm:$0xf0]  ;;  %v2545_v43 = vor.u32 %v3547_v39, %v2544_v38  ;;  %v2540_v45 = vld [vmem:[#allocation7 + $0x58] sm:$0xf]  ;;  %v3546_v46 = vld [vmem:[#allocation7 + $0x80] sm:$0xf0] }
  0x21   :  { %v114_v26 = vsub.f32 1.0, %v113_v19  ;;  %v2577_v44 = vor.u32 %v3555_v42, %v2576_v41  ;;  %v2572_v48 = vld [vmem:[#allocation7 + $0x318] sm:$0xf]  ;;  %v3554_v49 = vld [vmem:[#allocation7 + $0x340] sm:$0xf0]  ;;  %v2541_v51 = vor.u32 %v3546_v46, %v2540_v45  ;;  %vm1387_vm6 = vcmask 261120  }
  0x22   :  { %v2573_v53 = vor.u32 %v3554_v49, %v2572_v48  ;;  %v2536_v59 = vld [vmem:[#allocation7] sm:$0xf]  ;;  %v3545_v60 = vld [vmem:[#allocation7 + $0x28] sm:$0xf0]  ;;  %v3666_v3 = vld [vmem:[#allocation7 + $0x554] sm:$0xf0] }
  0x23   :  { %291 = vmatpush.bf16.msra.mxu0 %v2557_v22  ;;  %v115_v33 = vmul.f32 %v3821_v11, %v114_v26  ;;  %v2568_v61 = vld [vmem:[#allocation7 + $0x2c0] sm:$0xf]  ;;  %v2537_v62 = vor.u32 %v3545_v60, %v2536_v59  ;;  %v3553_v63 = vld [vmem:[#allocation7 + $0x2e8] sm:$0xf0]  ;;  %v3615_v6 = vld [vmem:[#allocation7 + $0x270] sm:$0xf] }
  0x24   :  { %304 = vmatpush.bf16.msra.mxu1 %v2589_v23  ;;  %v3009_v2 = vld [vmem:[#allocation7 + $0x52c] sm:$0xf]  ;;  %v2569_v4 = vor.u32 %v3553_v63, %v2568_v61  ;;  %v2819_v7 = vld [vmem:[#allocation7 + $0x298] sm:$0xf0]  ;;  %v2985_v9 = vld [vmem:[#allocation7 + $0x4d4] sm:$0xf] }
  0x25   :  { %v116_v40 = vadd.f32 %v3821_v11, %v115_v33  ;;  %v3010_v5 = vor.u32 %v3666_v3, %v3009_v2  ;;  %v2822_v8 = vor.u32 %v3615_v6, %v2819_v7  ;;  %v3660_v10 = vld [vmem:[#allocation7 + $0x4fc] sm:$0xf0]  ;;  %v2795_v13 = vld [vmem:[#allocation7 + $0x240] sm:$0xf0]  ;;  %v2961_v15 = vld [vmem:[#allocation7 + $0x47c] sm:$0xf] }
  0x26   :  { %v2986_v12 = vor.u32 %v3660_v10, %v2985_v9  ;;  %v3654_v16 = vld [vmem:[#allocation7 + $0x4a4] sm:$0xf0]  ;;  %v3603_v17 = vld [vmem:[#allocation7 + $0x1c0] sm:$0xf]  ;;  %v2771_v19 = vld [vmem:[#allocation7 + $0x1e8] sm:$0xf0] }
  0x27   :  { %292 = vmatpush.bf16.msra.mxu0 %v2553_v29  ;;  %v4100_v47 = vsel %vm117_vm0, %v3821_v11, %v116_v40  ;;  %v3609_v11 = vld [vmem:[#allocation7 + $0x218] sm:$0xf]  ;;  %v2962_v18 = vor.u32 %v3654_v16, %v2961_v15  ;;  %v2774_v20 = vor.u32 %v3603_v17, %v2771_v19  ;;  %v2937_v21 = vld [vmem:[#allocation7 + $0x424] sm:$0xf]  ;;  %v3648_v22 = vld [vmem:[#allocation7 + $0x44c] sm:$0xf0] }
  0x28   :  { %305 = vmatpush.bf16.msra.mxu1 %v2585_v30  ;;  %v2798_v14 = vor.u32 %v3609_v11, %v2795_v13  ;;  %v3597_v23 = vld [vmem:[#allocation7 + $0x168] sm:$0xf]  ;;  %v2938_v24 = vor.u32 %v3648_v22, %v2937_v21  ;;  %v2747_v25 = vld [vmem:[#allocation7 + $0x190] sm:$0xf0]  ;;  %v2913_v27 = vld [vmem:[#allocation7 + $0x3cc] sm:$0xf] }
  0x29   :  { %v2750_v26 = vor.u32 %v3597_v23, %v2747_v25  ;;  %v3642_v28 = vld [vmem:[#allocation7 + $0x3f4] sm:$0xf0]  ;;  %v3591_v29 = vld [vmem:[#allocation7 + $0x110] sm:$0xf]  ;;  %v2723_v31 = vld [vmem:[#allocation7 + $0x138] sm:$0xf0] }
  0x2a   :  { %v2914_v30 = vor.u32 %v3642_v28, %v2913_v27  ;;  %v2726_v32 = vor.u32 %v3591_v29, %v2723_v31  ;;  %v2889_v33 = vld [vmem:[#allocation7 + $0x374] sm:$0xf]  ;;  %v3636_v34 = vld [vmem:[#allocation7 + $0x39c] sm:$0xf0]  ;;  %v3585_v35 = vld [vmem:[#allocation7 + $0xb8] sm:$0xf] }
  0x2b   :  { %293 = vmatpush.bf16.msra.mxu0 %v2549_v36  ;;  %v2890_v36 = vor.u32 %v3636_v34, %v2889_v33  ;;  %v2865_v38 = vld [vmem:[#allocation7 + $0x31c] sm:$0xf]  ;;  %v3630_v39 = vld [vmem:[#allocation7 + $0x344] sm:$0xf0]  ;;  %v3579_v41 = vld [vmem:[#allocation7 + $0x60] sm:$0xf] }
  0x2c   :  { %306 = vmatpush.bf16.msra.mxu1 %v2581_v37  ;;  %v2699_v37 = vld [vmem:[#allocation7 + $0xe0] sm:$0xf0]  ;;  %v2675_v42 = vld [vmem:[#allocation7 + $0x88] sm:$0xf0]  ;;  %v3624_v46 = vld [vmem:[#allocation7 + $0x2ec] sm:$0xf0] }
  0x2d   :  { %v2702_v40 = vor.u32 %v3585_v35, %v2699_v37  ;;  %v2841_v45 = vld [vmem:[#allocation7 + $0x2c4] sm:$0xf]  ;;  %v3573_v48 = vld [vmem:[#allocation7 + $0x8] sm:$0xf]  ;;  %v2651_v49 = vld [vmem:[#allocation7 + $0x30] sm:$0xf0] }
  0x2e   :  { %v107_v2 = vld [vmem:[#allocation10] sm:$0x3]  ;;  %v3616_v16 = vld [vmem:[#allocation7 + $0x278] sm:$0xf]  ;;  %v2827_v17 = vld [vmem:[#allocation7 + $0x2a0] sm:$0xf0] }
  0x2f   :  { %294 = vmatpush.bf16.msra.mxu0 %v2545_v43  ;;  %v2866_v43 = vor.u32 %v3630_v39, %v2865_v38  ;;  %v143_v6 = vperm.slane %v107_v2, 1  ;;  %v3667_v15 = vld [vmem:[#allocation7 + $0x55c] sm:$0xf0]  ;;  %v2830_v21 = vor.u32 %v3616_v16, %v2827_v17  ;;  %v2993_v22 = vld [vmem:[#allocation7 + $0x4dc] sm:$0xf]  ;;  %vm1417_vm7 = vcmask 130048  }
  0x30   :  { %307 = vmatpush.bf16.msra.mxu1 %v2577_v44  ;;  %v2678_v44 = vor.u32 %v3579_v41, %v2675_v42  ;;  %v3610_v25 = vld [vmem:[#allocation7 + $0x220] sm:$0xf]  ;;  %v2969_v28 = vld [vmem:[#allocation7 + $0x484] sm:$0xf]  ;;  %v3655_v29 = vld [vmem:[#allocation7 + $0x4ac] sm:$0xf0] }
  0x31   :  { %v2779_v31 = vld [vmem:[#allocation7 + $0x1f0] sm:$0xf0]  ;;  %v2945_v34 = vld [vmem:[#allocation7 + $0x42c] sm:$0xf]  ;;  %v3649_v35 = vld [vmem:[#allocation7 + $0x454] sm:$0xf0] }
  0x32   :  { %v2755_v37 = vld [vmem:[#allocation7 + $0x198] sm:$0xf0]  ;;  %v2946_v38 = vor.u32 %v3649_v35, %v2945_v34  ;;  %v3643_v41 = vld [vmem:[#allocation7 + $0x3fc] sm:$0xf0]  ;;  %v3592_v42 = vld [vmem:[#allocation7 + $0x118] sm:$0xf] }
  0x33   :  { %295 = vmatpush.bf16.msra.mxu0 %v2541_v51  ;;  %v2654_v51 = vor.u32 %v3573_v48, %v2651_v49  ;;  %v2897_v49 = vld [vmem:[#allocation7 + $0x37c] sm:$0xf]  ;;  %v3611_v16 = vld [vmem:[#allocation7 + $0x228] sm:$0xf]  ;;  %v2811_v17 = vld [vmem:[#allocation7 + $0x250] sm:$0xf0] }
  0x34   :  { %308 = vmatpush.bf16.msra.mxu1 %v2573_v53  ;;  %vm2509_vm8 = vcmask 7168   ;;  %s2518_s22 = sshll.u32 %s4345_s8, 4  ;;  %s2519_s22 = int_to_ptr.hbm [resolvable:$true] %s2518_s22 }
  0x37   :  { %296 = vmatpush.bf16.msra.mxu0 %v2537_v62 }
  0x38   :  { %309 = vmatpush.bf16.msra.mxu1 %v2569_v4  ;;  %v108_v4 = vld [vmem:[#allocation10 + $0x2] sm:$0x3] }
  0x39   :  { %v149_v9 = vperm.slane %v108_v4, 0  ;;  %v150_v11 = vperm.slane %v108_v4, 1  ;;  %v3025_v4 = vld [vmem:[#allocation7 + $0x53c] sm:$0xf] }
  0x3b   :  { %1101 = vmatpush.bf16.msrb.mxu0 %v3010_v5  ;;  %v142_v5 = vperm.slane %v107_v2, 0  ;;  %v3574_v2 = vld [vmem:[#allocation7 + $0x10] sm:$0xf] }
  0x3c   :  { %1114 = vmatpush.bf16.msrb.mxu1 %v2822_v8 }
  0x3f   :  { %1102 = vmatpush.bf16.msrb.mxu0 %v2986_v12  ;;  %v3017_v12 = vld [vmem:[#allocation7 + $0x534] sm:$0xf] }
  0x40   :  { %1115 = vmatpush.bf16.msrb.mxu1 %v2798_v14 }
  0x43   :  { %1103 = vmatpush.bf16.msrb.mxu0 %v2962_v18 }
  0x44   :  { %1116 = vmatpush.bf16.msrb.mxu1 %v2774_v20  ;;  %v3018_v20 = vor.u32 %v3667_v15, %v3017_v12  ;;  %v3662_v15 = vld [vmem:[#allocation7 + $0x50c] sm:$0xf0] }
  0x47   :  { %1104 = vmatpush.bf16.msrb.mxu0 %v2938_v24  ;;  %v3661_v24 = vld [vmem:[#allocation7 + $0x504] sm:$0xf0] }
  0x48   :  { %1117 = vmatpush.bf16.msrb.mxu1 %v2750_v26  ;;  %v2994_v26 = vor.u32 %v3661_v24, %v2993_v22  ;;  %v3605_v22 = vld [vmem:[#allocation7 + $0x1d0] sm:$0xf] }
  0x4b   :  { %1105 = vmatpush.bf16.msrb.mxu0 %v2914_v30  ;;  %v3604_v30 = vld [vmem:[#allocation7 + $0x1c8] sm:$0xf] }
  0x4c   :  { %1118 = vmatpush.bf16.msrb.mxu1 %v2726_v32  ;;  %v2970_v32 = vor.u32 %v3655_v29, %v2969_v28  ;;  %v2782_v33 = vor.u32 %v3604_v30, %v2779_v31  ;;  %v2929_v30 = vld [vmem:[#allocation7 + $0x3dc] sm:$0xf]  ;;  %v3644_v31 = vld [vmem:[#allocation7 + $0x404] sm:$0xf0] }
  0x4d   :  { %v2930_v34 = vor.u32 %v3644_v31, %v2929_v30  ;;  %v3067_v30 = vld [vmem:[#allocation7 + $0xcc] sm:$0xf]  ;;  %v3679_v31 = vld [vmem:[#allocation7 + $0xf4] sm:$0xf0] }
  0x4f   :  { %1106 = vmatpush.bf16.msrb.mxu0 %v2890_v36  ;;  %v3598_v36 = vld [vmem:[#allocation7 + $0x170] sm:$0xf] }
  0x50   :  { %1119 = vmatpush.bf16.msrb.mxu1 %v2702_v40  ;;  %v2758_v39 = vor.u32 %v3598_v36, %v2755_v37  ;;  %v2921_v40 = vld [vmem:[#allocation7 + $0x3d4] sm:$0xf]  ;;  %v2905_v36 = vld [vmem:[#allocation7 + $0x384] sm:$0xf]  ;;  %v3638_v37 = vld [vmem:[#allocation7 + $0x3ac] sm:$0xf0] }
  0x53   :  { %1107 = vmatpush.bf16.msrb.mxu0 %v2866_v43  ;;  %v2731_v43 = vld [vmem:[#allocation7 + $0x140] sm:$0xf0] }
  0x54   :  { %1120 = vmatpush.bf16.msrb.mxu1 %v2678_v44  ;;  %v4128_v44 = vpack.c.bf16 %v4094_v0, %v4094_v0  ;;  %v2734_v48 = vor.u32 %v3592_v42, %v2731_v43  ;;  %v2881_v42 = vld [vmem:[#allocation7 + $0x32c] sm:$0xf]  ;;  %v3632_v43 = vld [vmem:[#allocation7 + $0x354] sm:$0xf0] }
  0x58   :  { %1121 = vmatpush.bf16.msrb.mxu1 %v2654_v51  ;;  %v3586_v51 = vld [vmem:[#allocation7 + $0xc0] sm:$0xf] }
  0x8d   :  { %v111_v50 = vpop.xlane.xlu0 %110 }
  0x8e   :  { %v119_v52 = vmul.f32 %v4100_v47, %v111_v50  ;;  %v2842_v50 = vor.u32 %v3624_v46, %v2841_v45  ;;  %v4132_v45 = vpack.c.bf16 %v4096_v1, %v4096_v1  ;;  %v2922_v46 = vor.u32 %v3643_v41, %v2921_v40 }
  0x8f   :  { %v2906_v40 = vor.u32 %v3638_v37, %v2905_v36  ;;  %v3068_v36 = vor.u32 %v3679_v31, %v3067_v30  ;;  %v3657_v31 = vld [vmem:[#allocation7 + $0x4d8] sm:$0xf] }
  0x90   :  { %v4104_v54 = vsub.f32 %v4094_v0, %v119_v52  ;;  %v4107_v55 = vsub.f32 %v4096_v1, %v119_v52  ;;  %1108 = vmatpush.bf16.msrb.mxu0 %v2842_v50  ;;  %v3637_v50 = vld [vmem:[#allocation7 + $0x3a4] sm:$0xf0] }
  0x91   :  { %v2898_v0 = vor.u32 %v3637_v50, %v2897_v49  ;;  %v3580_v1 = vld [vmem:[#allocation7 + $0x68] sm:$0xf]  ;;  %v2882_v49 = vor.u32 %v3632_v43, %v2881_v42  ;;  %v3179_v42 = vld [vmem:[#allocation7 + $0x334] sm:$0xf]  ;;  %v3707_v43 = vld [vmem:[#allocation7 + $0x35c] sm:$0xf0] }
  0x92   :  { %v122_v56 = vmul.f32 %v4104_v54, %v4104_v54  ;;  %v123_v57 = vmul.f32 %v4107_v55, %v4107_v55 }
  0x94   :  { %v124_v58 = vadd.f32 %v123_v57, %v122_v56  ;;  %v4114_v57 = vld [vmem:[#allocation5] sm:$0xff] }
  0x96   :  { %125 = vadd.xlane.f32.xlu0 %v124_v58  ;;  %v1339_v58 = vsel %vm1338_vm1, %v4114_v57, -inf }
  0x97   :  { %1340 = vmax.xlane.f32.xlu1 %v1339_v58  ;;  %v3631_v58 = vld [vmem:[#allocation7 + $0x34c] sm:$0xf0] }
 0x109   :  { %v126_v52 = vpop.xlane.xlu0 %125 }
 0x10a   :  { %v127_v53 = vmul.f32 %v126_v52, %v4100_v47  ;;  %v2707_v52 = vld [vmem:[#allocation7 + $0xe8] sm:$0xf0] }
 0x10c   :  { %v128_v56 = vadd.f32 1e-05, %v127_v53  ;;  %v2710_v53 = vor.u32 %v3586_v51, %v2707_v52  ;;  %v2857_v51 = vld [vmem:[#allocation7 + $0x2d4] sm:$0xf]  ;;  %v3626_v52 = vld [vmem:[#allocation7 + $0x2fc] sm:$0xf0] }
 0x10e   :  { %3822 = vrsqrt.f32 %v128_v56  ;;  %vm135_vm3 = vweird.f32 %v128_v56 }
 0x114   :  { %v3823_v59 = vpop.eup %3822 }
 0x115   :  { %v130_v60 = vmul.f32 %v3823_v59, %v128_v56  ;;  %vm136_vm2 = vweird.f32 %v3823_v59  ;;  %v2873_v56 = vld [vmem:[#allocation7 + $0x324] sm:$0xf] }
 0x116   :  { %vm137_vm4 = vmor %vm135_vm3, %vm136_vm2 }
 0x117   :  { %v131_v61 = vmul.f32 %v3823_v59, %v130_v60  ;;  %v2874_v60 = vor.u32 %v3631_v58, %v2873_v56  ;;  %v3147_v56 = vld [vmem:[#allocation7 + $0x284] sm:$0xf]  ;;  %v3699_v58 = vld [vmem:[#allocation7 + $0x2ac] sm:$0xf0] }
 0x119   :  { %v132_v62 = vmul.f32 0.5, %v131_v61 }
 0x11b   :  { %v133_v63 = vsub.f32 1.5, %v132_v62  ;;  %v2849_v62 = vld [vmem:[#allocation7 + $0x2cc] sm:$0xf] }
 0x11d   :  { %v134_v3 = vmul.f32 %v3823_v59, %v133_v63  ;;  %v3625_v63 = vld [vmem:[#allocation7 + $0x2f4] sm:$0xf0] }
 0x11f   :  { %v138_v7 = vsel %vm137_vm4, %v3823_v59, %v134_v3  ;;  %v2683_v59 = vld [vmem:[#allocation7 + $0x90] sm:$0xf0]  ;;  %v2659_v3 = vld [vmem:[#allocation7 + $0x38] sm:$0xf0] }
 0x120   :  { %v4119_v8 = vmul.f32 %v138_v7, %v4104_v54  ;;  %v4122_v10 = vmul.f32 %v138_v7, %v4107_v55  ;;  %v2803_v55 = vld [vmem:[#allocation7 + $0x248] sm:$0xf0]  ;;  %v2686_v61 = vor.u32 %v3580_v1, %v2683_v59  ;;  %v3275_v1 = vld [vmem:[#allocation7 + $0x544] sm:$0xf]  ;;  %v3731_v59 = vld [vmem:[#allocation7 + $0x56c] sm:$0xf0] }
 0x121   :  { %v2806_v27 = vor.u32 %v3610_v25, %v2803_v55  ;;  %v2835_v7 = vld [vmem:[#allocation7 + $0x2a8] sm:$0xf0]  ;;  %v2953_v25 = vld [vmem:[#allocation7 + $0x434] sm:$0xf]  ;;  %v3650_v55 = vld [vmem:[#allocation7 + $0x45c] sm:$0xf0] }
 0x122   :  { %v146_v13 = vmul.f32 %v142_v5, %v4119_v8  ;;  %v147_v14 = vmul.f32 %v143_v6, %v4122_v10  ;;  %v3668_v5 = vld [vmem:[#allocation7 + $0x564] sm:$0xf0]  ;;  %v3617_v6 = vld [vmem:[#allocation7 + $0x280] sm:$0xf]  ;;  %v2954_v28 = vor.u32 %v3650_v55, %v2953_v25  ;;  %v3211_v25 = vld [vmem:[#allocation7 + $0x3e4] sm:$0xf] }
 0x123   :  { %v3026_v12 = vor.u32 %v3668_v5, %v3025_v4  ;;  %v3259_v4 = vld [vmem:[#allocation7 + $0x4ec] sm:$0xf]  ;;  %v3727_v5 = vld [vmem:[#allocation7 + $0x514] sm:$0xf0]  ;;  %v3715_v55 = vld [vmem:[#allocation7 + $0x40c] sm:$0xf0] }
 0x124   :  { %v153_v18 = vadd.f32 %v149_v9, %v146_v13  ;;  %v154_v19 = vadd.f32 %v150_v11, %v147_v14  ;;  %v2850_v9 = vor.u32 %v3625_v63, %v2849_v62  ;;  %v2662_v11 = vor.u32 %v3574_v2, %v2659_v3  ;;  %v3001_v14 = vld [vmem:[#allocation7 + $0x4e4] sm:$0xf]  ;;  %v3131_v2 = vld [vmem:[#allocation7 + $0x22c] sm:$0xf]  ;;  %v3695_v3 = vld [vmem:[#allocation7 + $0x254] sm:$0xf0] }
 0x125   :  { %v2838_v13 = vor.u32 %v3617_v6, %v2835_v7  ;;  %v3148_v62 = vor.u32 %v3699_v58, %v3147_v56  ;;  %v3276_v63 = vor.u32 %v3731_v59, %v3275_v1  ;;  %v3132_v6 = vor.u32 %v3695_v3, %v3131_v2  ;;  %v3703_v58 = vld [vmem:[#allocation7 + $0x304] sm:$0xf0]  ;;  %v3155_v1 = vld [vmem:[#allocation7 + $0x28c] sm:$0xf] }
 0x126   :  { %v187_v54 = vpack.c.bf16 %v153_v18, %v153_v18  ;;  %v188_v23 = vpack.c.bf16 %v154_v19, %v154_v19  ;;  %v3002_v18 = vor.u32 %v3662_v15, %v3001_v14  ;;  %v2814_v19 = vor.u32 %v3611_v16, %v2811_v17  ;;  %v3568_v14 = vld [vmem:[%s4340_s3 + $0x38] sm:$0xff]  ;;  %v3099_v17 = vld [vmem:[#allocation7 + $0x17c] sm:$0xf] }
 0x127   :  { %v3260_v7 = vor.u32 %v3727_v5, %v3259_v4  ;;  %393 = vmatpush.bf16.msra.mxu2 %v3568_v14  ;;  %v3663_v14 = vld [vmem:[#allocation7 + $0x530] sm:$0xf] }
 0x128   :  { %297 = vmatmul.bf16.vlgmr.msra.gmra.mxu0 %v187_v54  ;;  %310 = vmatmul.bf16.vlgmr.msra.gmra.mxu1 %v188_v23  ;;  %v2787_v54 = vld [vmem:[#allocation7 + $0x1f8] sm:$0xf0] }
 0x129   :  { %1153 = vmatpush.bf16.msra.mxu0 %v3018_v20  ;;  %1166 = vmatpush.bf16.msra.mxu1 %v2830_v21  ;;  %v2977_v20 = vld [vmem:[#allocation7 + $0x48c] sm:$0xf]  ;;  %v3656_v21 = vld [vmem:[#allocation7 + $0x4b4] sm:$0xf0]  ;;  %v2790_v24 = vor.u32 %v3605_v22, %v2787_v54 }
 0x12a   :  { %v2978_v23 = vor.u32 %v3656_v21, %v2977_v20  ;;  %v3719_v20 = vld [vmem:[#allocation7 + $0x464] sm:$0xf0]  ;;  %v3567_v21 = vld [vmem:[%s4340_s3 + $0x30] sm:$0xff] }
 0x12b   :  { %394 = vmatpush.bf16.msra.mxu2 %v3567_v21  ;;  %v3251_v21 = vld [vmem:[#allocation7 + $0x49c] sm:$0xf] }
 0x12d   :  { %1154 = vmatpush.bf16.msra.mxu0 %v2994_v26  ;;  %1167 = vmatpush.bf16.msra.mxu1 %v2806_v27  ;;  %v3599_v26 = vld [vmem:[#allocation7 + $0x178] sm:$0xf]  ;;  %v2763_v27 = vld [vmem:[#allocation7 + $0x1a0] sm:$0xf0] }
 0x12e   :  { %v2766_v29 = vor.u32 %v3599_v26, %v2763_v27  ;;  %v3566_v26 = vld [vmem:[%s4340_s3 + $0x28] sm:$0xff] }
 0x12f   :  { %395 = vmatpush.bf16.msra.mxu2 %v3566_v26  ;;  %v1439_v27 = vld [vmem:[#allocation10 + $0x13] sm:$0x3] }
 0x130   :  { %v3688_v26 = vld [vmem:[#allocation7 + $0x1ac] sm:$0xf0] }
 0x131   :  { %1155 = vmatpush.bf16.msra.mxu0 %v2970_v32  ;;  %1168 = vmatpush.bf16.msra.mxu1 %v2782_v33  ;;  %v3593_v32 = vld [vmem:[#allocation7 + $0x120] sm:$0xf]  ;;  %v2739_v33 = vld [vmem:[#allocation7 + $0x148] sm:$0xf0] }
 0x132   :  { %v2742_v35 = vor.u32 %v3593_v32, %v2739_v33  ;;  %v3195_v32 = vld [vmem:[#allocation7 + $0x38c] sm:$0xf]  ;;  %v3711_v33 = vld [vmem:[#allocation7 + $0x3b4] sm:$0xf0] }
 0x133   :  { %v3196_v37 = vor.u32 %v3711_v33, %v3195_v32  ;;  %v2987_v32 = vld [vmem:[#allocation7 + $0x500] sm:$0xf0]  ;;  %v3091_v33 = vld [vmem:[#allocation7 + $0x12c] sm:$0xf] }
 0x135   :  { %1156 = vmatpush.bf16.msra.mxu0 %v2946_v38  ;;  %1169 = vmatpush.bf16.msra.mxu1 %v2758_v39  ;;  %v3587_v38 = vld [vmem:[#allocation7 + $0xc8] sm:$0xf]  ;;  %v2715_v39 = vld [vmem:[#allocation7 + $0xf0] sm:$0xf0] }
 0x136   :  { %v2718_v41 = vor.u32 %v3587_v38, %v2715_v39  ;;  %v3051_v38 = vld [vmem:[#allocation7 + $0x74] sm:$0xf]  ;;  %v3675_v39 = vld [vmem:[#allocation7 + $0x9c] sm:$0xf0] }
 0x138   :  { %1109 = vmatmul.bf16.vlgmr.msrb.gmra.mxu0 %v4132_v45  ;;  %1122 = vmatmul.bf16.vlgmr.msrb.gmra.mxu1 %v4128_v44 }
 0x139   :  { %1157 = vmatpush.bf16.msra.mxu0 %v2922_v46  ;;  %1170 = vmatpush.bf16.msra.mxu1 %v2734_v48  ;;  %v3581_v46 = vld [vmem:[#allocation7 + $0x70] sm:$0xf]  ;;  %v2691_v48 = vld [vmem:[#allocation7 + $0x98] sm:$0xf0] }
 0x13a   :  { %v2694_v50 = vor.u32 %v3581_v46, %v2691_v48  ;;  %v3564_v46 = vld [vmem:[%s4340_s3 + $0x18] sm:$0xff] }
 0x13d   :  { %1158 = vmatpush.bf16.msra.mxu0 %v2898_v0  ;;  %1171 = vmatpush.bf16.msra.mxu1 %v2710_v53  ;;  %v3575_v0 = vld [vmem:[#allocation7 + $0x18] sm:$0xf]  ;;  %v2667_v53 = vld [vmem:[#allocation7 + $0x40] sm:$0xf0] }
 0x141   :  { %1159 = vmatpush.bf16.msra.mxu0 %v2874_v60  ;;  %1172 = vmatpush.bf16.msra.mxu1 %v2686_v61  ;;  %v2858_v60 = vor.u32 %v3626_v52, %v2857_v51  ;;  %v2670_v61 = vor.u32 %v3575_v0, %v2667_v53  ;;  %v3180_v51 = vor.u32 %v3707_v43, %v3179_v42  ;;  %v3035_v52 = vld [vmem:[#allocation7 + $0x1c] sm:$0xf]  ;;  %v3671_v0 = vld [vmem:[#allocation7 + $0x44] sm:$0xf0]  ;;  %v3716_v42 = vld [vmem:[#allocation7 + $0x414] sm:$0xf0] }
 0x142   :  { %v3163_v53 = vld [vmem:[#allocation7 + $0x2dc] sm:$0xf] }
 0x143   :  { %v3164_v2 = vor.u32 %v3703_v58, %v3163_v53  ;;  %v2915_v58 = vld [vmem:[#allocation7 + $0x3f8] sm:$0xf0] }
 0x145   :  { %1160 = vmatpush.bf16.msra.mxu0 %v2850_v9  ;;  %1173 = vmatpush.bf16.msra.mxu1 %v2662_v11  ;;  %v3115_v9 = vld [vmem:[#allocation7 + $0x1d4] sm:$0xf]  ;;  %v3691_v11 = vld [vmem:[#allocation7 + $0x1fc] sm:$0xf0] }
 0x146   :  { %v3116_v15 = vor.u32 %v3691_v11, %v3115_v9  ;;  %v3267_v9 = vld [vmem:[#allocation7 + $0x4f4] sm:$0xf]  ;;  %v3728_v11 = vld [vmem:[#allocation7 + $0x51c] sm:$0xf0] }
 0x148   :  { %1161 = vmatmul.bf16.vlgmr.msra.gmra.mxu0 %v4132_v45  ;;  %1174 = vmatmul.bf16.vlgmr.msra.gmra.mxu1 %v4128_v44 }
 0x149   :  { %1205 = vmatpush.bf16.msrb.mxu0 %v3026_v12  ;;  %1218 = vmatpush.bf16.msrb.mxu1 %v2838_v13  ;;  %v3243_v12 = vld [vmem:[#allocation7 + $0x494] sm:$0xf]  ;;  %v3723_v13 = vld [vmem:[#allocation7 + $0x4bc] sm:$0xf0] }
 0x14a   :  { %v3244_v16 = vor.u32 %v3723_v13, %v3243_v12  ;;  %v3562_v12 = vld [vmem:[%s4340_s3 + $0x8] sm:$0xff] }
 0x14d   :  { %1206 = vmatpush.bf16.msrb.mxu0 %v3002_v18  ;;  %1219 = vmatpush.bf16.msrb.mxu1 %v2814_v19  ;;  %v3687_v18 = vld [vmem:[#allocation7 + $0x1a4] sm:$0xf0]  ;;  %v3227_v19 = vld [vmem:[#allocation7 + $0x43c] sm:$0xf] }
 0x14e   :  { %v3100_v22 = vor.u32 %v3687_v18, %v3099_v17  ;;  %v3228_v54 = vor.u32 %v3719_v20, %v3227_v19  ;;  %v3268_v18 = vor.u32 %v3728_v11, %v3267_v9  ;;  %v3123_v19 = vld [vmem:[#allocation7 + $0x1dc] sm:$0xf]  ;;  %v3692_v20 = vld [vmem:[#allocation7 + $0x204] sm:$0xf0]  ;;  %v3672_v9 = vld [vmem:[#allocation7 + $0x4c] sm:$0xf0] }
 0x14f   :  { %v3171_v11 = vld [vmem:[#allocation7 + $0x2e4] sm:$0xf] }
 0x151   :  { %1207 = vmatpush.bf16.msrb.mxu0 %v2978_v23  ;;  %1220 = vmatpush.bf16.msrb.mxu1 %v2790_v24  ;;  %v3083_v23 = vld [vmem:[#allocation7 + $0x124] sm:$0xf]  ;;  %v3683_v24 = vld [vmem:[#allocation7 + $0x14c] sm:$0xf0] }
 0x155   :  { %1208 = vmatpush.bf16.msrb.mxu0 %v2954_v28  ;;  %1221 = vmatpush.bf16.msrb.mxu1 %v2766_v29  ;;  %v3084_v28 = vor.u32 %v3683_v24, %v3083_v23  ;;  %v3212_v29 = vor.u32 %v3715_v55, %v3211_v25  ;;  %v3124_v24 = vor.u32 %v3692_v20, %v3123_v19  ;;  %v3107_v55 = vld [vmem:[#allocation7 + $0x184] sm:$0xf] }
 0x159   :  { %1209 = vmatpush.bf16.msrb.mxu0 %v2930_v34  ;;  %1222 = vmatpush.bf16.msrb.mxu1 %v2742_v35  ;;  %v3565_v34 = vld [vmem:[%s4340_s3 + $0x20] sm:$0xff]  ;;  %v1442_v35 = vperm.slane %v1439_v27, 0 }
 0x15a   :  { %396 = vmatpush.bf16.msra.mxu2 %v3565_v34  ;;  %v2990_v34 = vor.u32 %v3657_v31, %v2987_v32 }
 0x15d   :  { %1210 = vmatpush.bf16.msrb.mxu0 %v2906_v40  ;;  %1223 = vmatpush.bf16.msrb.mxu1 %v2718_v41  ;;  %v1440_v40 = vld [vmem:[#allocation10 + $0x15] sm:$0x3]  ;;  %v1443_v41 = vperm.slane %v1439_v27, 1  ;;  %v3235_v27 = vld [vmem:[#allocation7 + $0x444] sm:$0xf] }
 0x15e   :  { %v1449_v48 = vperm.slane %v1440_v40, 0  ;;  %397 = vmatpush.bf16.msra.mxu2 %v3564_v46  ;;  %v1450_v59 = vperm.slane %v1440_v40, 1  ;;  %v3684_v40 = vld [vmem:[#allocation7 + $0x154] sm:$0xf0] }
 0x15f   :  { %v1447_v56 = vmul.f32 %v1443_v41, %v4122_v10  ;;  %v3139_v10 = vld [vmem:[#allocation7 + $0x234] sm:$0xf]  ;;  %v3219_v41 = vld [vmem:[#allocation7 + $0x3ec] sm:$0xf] }
 0x160   :  { %v3220_v46 = vor.u32 %v3716_v42, %v3219_v41 }
 0x161   :  { %1211 = vmatpush.bf16.msrb.mxu0 %v2882_v49  ;;  %1224 = vmatpush.bf16.msrb.mxu1 %v2694_v50  ;;  %v1446_v49 = vmul.f32 %v1442_v35, %v4119_v8  ;;  %v3052_v50 = vor.u32 %v3675_v39, %v3051_v38  ;;  %v3036_v8 = vor.u32 %v3671_v0, %v3035_v52  ;;  %v3651_v38 = vld [vmem:[#allocation7 + $0x480] sm:$0xf]  ;;  %v2963_v39 = vld [vmem:[#allocation7 + $0x4a8] sm:$0xf0]  ;;  %v3645_v52 = vld [vmem:[#allocation7 + $0x428] sm:$0xf] }
 0x162   :  { %v3108_v35 = vor.u32 %v3688_v26, %v3107_v55  ;;  %v2966_v43 = vor.u32 %v3651_v38, %v2963_v39  ;;  %v2939_v0 = vld [vmem:[#allocation7 + $0x450] sm:$0xf0]  ;;  %v3664_v39 = vld [vmem:[#allocation7 + $0x538] sm:$0xf] }
 0x163   :  { %v1453_v3 = vadd.f32 %v1449_v48, %v1446_v49  ;;  %v3075_v48 = vld [vmem:[#allocation7 + $0xd4] sm:$0xf]  ;;  %v3680_v49 = vld [vmem:[#allocation7 + $0xfc] sm:$0xf0]  ;;  %v2942_v53 = vor.u32 %v3645_v52, %v2939_v0 }
 0x164   :  { %v2971_v52 = vld [vmem:[#allocation7 + $0x4b0] sm:$0xf0] }
 0x165   :  { %1212 = vmatpush.bf16.msrb.mxu0 %v2858_v60  ;;  %1225 = vmatpush.bf16.msrb.mxu1 %v2670_v61  ;;  %v3563_v60 = vld [vmem:[%s4340_s3 + $0x10] sm:$0xff]  ;;  %v4163_v13 = vpack.c.bf16 %v1453_v3, %v1453_v3 }
 0x166   :  { %v3700_v61 = vld [vmem:[#allocation7 + $0x2b4] sm:$0xf0]  ;;  %398 = vmatpush.bf16.msra.mxu2 %v3563_v60 }
 0x167   :  { %v3156_v4 = vor.u32 %v3700_v61, %v3155_v1  ;;  %v3059_v61 = vld [vmem:[#allocation7 + $0x7c] sm:$0xf] }
 0x168   :  { %1213 = vmatmul.bf16.vlgmr.msrb.gmra.mxu0 %v4132_v45  ;;  %1226 = vmatmul.bf16.vlgmr.msrb.gmra.mxu1 %v4128_v44 }
 0x169   :  { %1851 = vmatpush.bf16.msra.mxu0 %v3148_v62  ;;  %1864 = vmatpush.bf16.msra.mxu1 %v3276_v63  ;;  %v3283_v62 = vld [vmem:[#allocation7 + $0x54c] sm:$0xf]  ;;  %v3732_v63 = vld [vmem:[#allocation7 + $0x574] sm:$0xf0] }
 0x16a   :  { %v3284_v5 = vor.u32 %v3732_v63, %v3283_v62  ;;  %399 = vmatpush.bf16.msra.mxu2 %v3562_v12  ;;  %v3676_v62 = vld [vmem:[#allocation7 + $0xa4] sm:$0xf0]  ;;  %v3187_v63 = vld [vmem:[#allocation7 + $0x33c] sm:$0xf]  ;;  %v3704_v12 = vld [vmem:[#allocation7 + $0x30c] sm:$0xf0] }
 0x16b   :  { %v3172_v19 = vor.u32 %v3704_v12, %v3171_v11 }
 0x16d   :  { %1852 = vmatpush.bf16.msra.mxu0 %v3132_v6  ;;  %1865 = vmatpush.bf16.msra.mxu1 %v3260_v7  ;;  %v1454_v6 = vadd.f32 %v1450_v59, %v1447_v56  ;;  %v3696_v7 = vld [vmem:[#allocation7 + $0x25c] sm:$0xf0]  ;;  %v3639_v56 = vld [vmem:[#allocation7 + $0x3d0] sm:$0xf]  ;;  %v3076_v59 = vor.u32 %v3680_v49, %v3075_v48  ;;  %v2995_v49 = vld [vmem:[#allocation7 + $0x508] sm:$0xf0] }
 0x16e   :  { %v3140_v17 = vor.u32 %v3696_v7, %v3139_v10  ;;  %v2918_v3 = vor.u32 %v3639_v56, %v2915_v58  ;;  %v3043_v7 = vld [vmem:[#allocation7 + $0x24] sm:$0xf]  ;;  %v3658_v48 = vld [vmem:[#allocation7 + $0x4e0] sm:$0xf]  ;;  %v3646_v58 = vld [vmem:[#allocation7 + $0x430] sm:$0xf] }
 0x171   :  { %1853 = vmatpush.bf16.msra.mxu0 %v3116_v15  ;;  %1866 = vmatpush.bf16.msra.mxu1 %v3244_v16  ;;  %v3011_v15 = vld [vmem:[#allocation7 + $0x558] sm:$0xf0]  ;;  %v4165_v16 = vpack.c.bf16 %v1454_v6, %v1454_v6  ;;  %v3060_v6 = vor.u32 %v3676_v62, %v3059_v61  ;;  %v3640_v61 = vld [vmem:[#allocation7 + $0x3d8] sm:$0xf]  ;;  %v2923_v62 = vld [vmem:[#allocation7 + $0x400] sm:$0xf0] }
 0x172   :  { %v3014_v23 = vor.u32 %v3663_v14, %v3011_v15  ;;  %v3627_v15 = vld [vmem:[#allocation7 + $0x320] sm:$0xf] }
 0x175   :  { %1854 = vmatpush.bf16.msra.mxu0 %v3100_v22  ;;  %1867 = vmatpush.bf16.msra.mxu1 %v3228_v54  ;;  %v3724_v22 = vld [vmem:[#allocation7 + $0x4c4] sm:$0xf0] }
 0x176   :  { %v3561_v54 = vld [vmem:[%s4340_s3] sm:$0xff]  ;;  %v3252_v25 = vor.u32 %v3724_v22, %v3251_v21  ;;  %v2843_v22 = vld [vmem:[#allocation7 + $0x2f0] sm:$0xf0] }
 0x177   :  { %400 = vmatpush.bf16.msra.mxu2 %v3561_v54  ;;  %v3621_v21 = vld [vmem:[#allocation7 + $0x2c8] sm:$0xf] }
 0x178   :  { %v2846_v54 = vor.u32 %v3621_v21, %v2843_v22  ;;  %v3622_v21 = vld [vmem:[#allocation7 + $0x2d0] sm:$0xf]  ;;  %v2851_v22 = vld [vmem:[#allocation7 + $0x2f8] sm:$0xf0] }
 0x179   :  { %1855 = vmatpush.bf16.msra.mxu0 %v3084_v28  ;;  %1868 = vmatpush.bf16.msra.mxu1 %v3212_v29  ;;  %v3720_v28 = vld [vmem:[#allocation7 + $0x46c] sm:$0xf0]  ;;  %v1341_v29 = vpop.xlane.xlu1 %1340 }
 0x17a   :  { %v1342_v30 = vsub.f32 %v4114_v57, %v1341_v29  ;;  %v3092_v57 = vor.u32 %v3684_v40, %v3091_v33  ;;  %v3019_v40 = vld [vmem:[#allocation7 + $0x560] sm:$0xf0] }
 0x17b   :  { %1127 = vmatpush.bf16.msrb.mxu2 %v3014_v23  ;;  %v3811_v23 = vld [vmem:[#allocation10 + $0x4] ss:$0 sm:$0xff] }
 0x17d   :  { %1856 = vmatpush.bf16.msra.mxu0 %v3068_v36  ;;  %1869 = vmatpush.bf16.msra.mxu1 %v3196_v37  ;;  %v3236_v36 = vor.u32 %v3720_v28, %v3235_v27  ;;  %v1343_v37 = vmul.f32 1.442695, %v1342_v30 }
 0x17f   :  { %3824 = vpow2.f32 %v1343_v37  ;;  %1128 = vmatpush.bf16.msrb.mxu2 %v2990_v34 }
 0x181   :  { %1857 = vmatpush.bf16.msra.mxu0 %v3052_v50  ;;  %1870 = vmatpush.bf16.msra.mxu1 %v3180_v51  ;;  %v3203_v50 = vld [vmem:[#allocation7 + $0x394] sm:$0xf]  ;;  %v3712_v51 = vld [vmem:[#allocation7 + $0x3bc] sm:$0xf0] }
 0x182   :  { %v3204_v60 = vor.u32 %v3712_v51, %v3203_v50  ;;  %v2998_v50 = vor.u32 %v3658_v48, %v2995_v49  ;;  %v3652_v51 = vld [vmem:[#allocation7 + $0x488] sm:$0xf]  ;;  %v3299_v48 = vld [vmem:[#allocation8 + $0x10] sm:$0xf]  ;;  %v3736_v49 = vld [vmem:[#allocation8 + $0x14] sm:$0xf0] }
 0x183   :  { %1129 = vmatpush.bf16.msrb.mxu2 %v2966_v43  ;;  %v2974_v56 = vor.u32 %v3652_v51, %v2971_v52  ;;  %v3641_v52 = vld [vmem:[#allocation7 + $0x3e0] sm:$0xf] }
 0x185   :  { %1858 = vmatpush.bf16.msra.mxu0 %v3036_v8  ;;  %1871 = vmatpush.bf16.msra.mxu1 %v3164_v2  ;;  %v4173_v1 = vpop.eup %3824  ;;  %v3708_v8 = vld [vmem:[#allocation7 + $0x364] sm:$0xf0] }
 0x186   :  { %v1345_v2 = vsel %vm1338_vm1, %v4173_v1, 0.0  ;;  %v3188_v10 = vor.u32 %v3708_v8, %v3187_v63  ;;  %v3347_v63 = vld [vmem:[#allocation8 + $0x70] sm:$0xf]  ;;  %v3748_v8 = vld [vmem:[#allocation8 + $0x74] sm:$0xf0] }
 0x187   :  { %1130 = vmatpush.bf16.msrb.mxu2 %v2942_v53  ;;  %1346 = vadd.xlane.f32.xlu1 %v1345_v2 }
 0x188   :  { %1859 = vmatmul.bf16.vlgmr.msra.gmra.mxu0 %v4163_v13  ;;  %1872 = vmatmul.bf16.vlgmr.msra.gmra.mxu1 %v4165_v16 }
 0x189   :  { %1903 = vmatpush.bf16.msrb.mxu0 %v3156_v4  ;;  %1916 = vmatpush.bf16.msrb.mxu1 %v3284_v5  ;;  %v3633_v4 = vld [vmem:[#allocation7 + $0x378] sm:$0xf]  ;;  %v2891_v5 = vld [vmem:[#allocation7 + $0x3a0] sm:$0xf0] }
 0x18a   :  { %v2894_v14 = vor.u32 %v3633_v4, %v2891_v5  ;;  %v3348_v4 = vor.u32 %v3748_v8, %v3347_v63  ;;  %v2926_v5 = vor.u32 %v3640_v61, %v2923_v62  ;;  %v3747_v61 = vld [vmem:[#allocation8 + $0x74] sm:$0xf]  ;;  %v3349_v62 = vld [vmem:[#allocation8 + $0x78] sm:$0xf0] }
 0x18b   :  { %1131 = vmatpush.bf16.msrb.mxu2 %v2918_v3 }
 0x18d   :  { %1904 = vmatpush.bf16.msrb.mxu0 %v3140_v17  ;;  %1917 = vmatpush.bf16.msrb.mxu1 %v3268_v18  ;;  %v2867_v17 = vld [vmem:[#allocation7 + $0x348] sm:$0xf0]  ;;  %v3044_v18 = vor.u32 %v3672_v9, %v3043_v7  ;;  %v3339_v7 = vld [vmem:[#allocation8 + $0x60] sm:$0xf]  ;;  %v3746_v9 = vld [vmem:[#allocation8 + $0x64] sm:$0xf0] }
 0x18e   :  { %v2870_v20 = vor.u32 %v3627_v15, %v2867_v17  ;;  %v3340_v11 = vor.u32 %v3746_v9, %v3339_v7  ;;  %v2875_v15 = vld [vmem:[#allocation7 + $0x350] sm:$0xf0]  ;;  %v3331_v17 = vld [vmem:[#allocation8 + $0x50] sm:$0xf] }
 0x18f   :  { %1132 = vmatpush.bf16.msrb.mxu2 %v2894_v14  ;;  %v3628_v14 = vld [vmem:[#allocation7 + $0x328] sm:$0xf] }
 0x191   :  { %1905 = vmatpush.bf16.msrb.mxu0 %v3124_v24  ;;  %1918 = vmatpush.bf16.msrb.mxu1 %v3252_v25 }
 0x193   :  { %1133 = vmatpush.bf16.msrb.mxu2 %v2870_v20  ;;  %v2878_v20 = vor.u32 %v3628_v14, %v2875_v15  ;;  %v3743_v14 = vld [vmem:[#allocation8 + $0x54] sm:$0xf]  ;;  %v3333_v15 = vld [vmem:[#allocation8 + $0x58] sm:$0xf0] }
 0x195   :  { %1906 = vmatpush.bf16.msrb.mxu0 %v3108_v35  ;;  %1919 = vmatpush.bf16.msrb.mxu1 %v3236_v36 }
 0x197   :  { %1134 = vmatpush.bf16.msrb.mxu2 %v2846_v54  ;;  %v3665_v54 = vld [vmem:[#allocation7 + $0x540] sm:$0xf] }
 0x199   :  { %1907 = vmatpush.bf16.msrb.mxu0 %v3092_v57  ;;  %1920 = vmatpush.bf16.msrb.mxu1 %v3220_v46  ;;  %v3022_v57 = vor.u32 %v3664_v39, %v3019_v40  ;;  %v3738_v39 = vld [vmem:[#allocation8 + $0x24] sm:$0xf0] }
 0x19d   :  { %1908 = vmatpush.bf16.msrb.mxu0 %v3076_v59  ;;  %1921 = vmatpush.bf16.msrb.mxu1 %v3204_v60  ;;  %v2947_v59 = vld [vmem:[#allocation7 + $0x458] sm:$0xf0] }
 0x19e   :  { %v2950_v60 = vor.u32 %v3646_v58, %v2947_v59  ;;  %v3291_v58 = vld [vmem:[#allocation8] sm:$0xf]  ;;  %v3734_v59 = vld [vmem:[#allocation8 + $0x4] sm:$0xf0] }
 0x1a1   :  { %1909 = vmatpush.bf16.msrb.mxu0 %v3060_v6  ;;  %1922 = vmatpush.bf16.msrb.mxu1 %v3188_v10  ;;  %v3634_v6 = vld [vmem:[#allocation7 + $0x380] sm:$0xf]  ;;  %v2899_v10 = vld [vmem:[#allocation7 + $0x3a8] sm:$0xf0] }
 0x1a2   :  { %v2902_v12 = vor.u32 %v3634_v6, %v2899_v10  ;;  %v3745_v6 = vld [vmem:[#allocation8 + $0x64] sm:$0xf]  ;;  %v3341_v10 = vld [vmem:[#allocation8 + $0x68] sm:$0xf0] }
 0x1a3   :  { %v3344_v7 = vor.u32 %v3745_v6, %v3341_v10  ;;  %v3677_v10 = vld [vmem:[#allocation7 + $0xd0] sm:$0xf] }
 0x1a5   :  { %1910 = vmatpush.bf16.msrb.mxu0 %v3044_v18  ;;  %1923 = vmatpush.bf16.msrb.mxu1 %v3172_v19  ;;  %v298_v24 = vpop.f32.mrf.mxu0  ;;  %v311_v25 = vpop.f32.mrf.mxu1  ;;  %v3744_v18 = vld [vmem:[#allocation8 + $0x54] sm:$0xf0] }
 0x1a6   :  { %v299_v55 = vadd.f32 %v3811_v23, %v298_v24  ;;  %v3332_v19 = vor.u32 %v3744_v18, %v3331_v17  ;;  %v3027_v23 = vld [vmem:[#allocation7 + $0x568] sm:$0xf0]  ;;  %v3323_v24 = vld [vmem:[#allocation8 + $0x40] sm:$0xf]  ;;  %v3336_v17 = vor.u32 %v3743_v14, %v3333_v15  ;;  %v3673_v14 = vld [vmem:[#allocation7 + $0x78] sm:$0xf] }
 0x1a7   :  { %v3053_v15 = vld [vmem:[#allocation7 + $0xa0] sm:$0xf0] }
 0x1a8   :  { %1911 = vmatmul.bf16.vlgmr.msrb.gmra.mxu0 %v4163_v13  ;;  %1924 = vmatmul.bf16.vlgmr.msrb.gmra.mxu1 %v4165_v16  ;;  %v312_v26 = vadd.f32 %v311_v25, %v299_v55  ;;  %v3742_v25 = vld [vmem:[#allocation8 + $0x44] sm:$0xf0] }
 0x1a9   :  { %2385 = vmatpush.bf16.msra.mxu0 %v3348_v4  ;;  %v3324_v55 = vor.u32 %v3742_v25, %v3323_v24  ;;  %v3635_v4 = vld [vmem:[#allocation7 + $0x388] sm:$0xf] }
 0x1aa   :  { %v316_v27 = vmul.f32 0.044715, %v312_v26  ;;  %v315_v37 = vmul.f32 0.5, %v312_v26 }
 0x1ac   :  { %v317_v28 = vmul.f32 %v316_v27, %v312_v26  ;;  %v3030_v27 = vor.u32 %v3665_v54, %v3027_v23  ;;  %v3741_v54 = vld [vmem:[#allocation8 + $0x44] sm:$0xf]  ;;  %v3325_v23 = vld [vmem:[#allocation8 + $0x48] sm:$0xf0] }
 0x1ad   :  { %v300_v29 = vpop.f32.mrf.mxu0  ;;  %v313_v30 = vpop.f32.mrf.mxu1  ;;  %2386 = vmatpush.bf16.msra.mxu0 %v3340_v11  ;;  %v3629_v11 = vld [vmem:[#allocation7 + $0x330] sm:$0xf]  ;;  %v3328_v24 = vor.u32 %v3741_v54, %v3325_v23 }
 0x1ae   :  { %v318_v31 = vmul.f32 %v317_v28, %v312_v26  ;;  %v3659_v28 = vld [vmem:[#allocation7 + $0x4e8] sm:$0xf]  ;;  %v3003_v29 = vld [vmem:[#allocation7 + $0x510] sm:$0xf0]  ;;  %v3315_v30 = vld [vmem:[#allocation8 + $0x30] sm:$0xf] }
 0x1b0   :  { %v319_v32 = vadd.f32 %v318_v31, %v312_v26  ;;  %v2854_v26 = vor.u32 %v3622_v21, %v2851_v22  ;;  %v3740_v31 = vld [vmem:[#allocation8 + $0x34] sm:$0xf0]  ;;  %v3697_v21 = vld [vmem:[#allocation7 + $0x288] sm:$0xf]  ;;  %v3149_v22 = vld [vmem:[#allocation7 + $0x2b0] sm:$0xf0] }
 0x1b1   :  { %2387 = vmatpush.bf16.msra.mxu0 %v3332_v19  ;;  %v3623_v19 = vld [vmem:[#allocation7 + $0x2d8] sm:$0xf] }
 0x1b2   :  { %v320_v33 = vmul.f32 0.7978846, %v319_v32  ;;  %v3316_v32 = vor.u32 %v3740_v31, %v3315_v30  ;;  %v3317_v30 = vld [vmem:[#allocation8 + $0x38] sm:$0xf0] }
 0x1b4   :  { %3826 = vtanh.f32 %v320_v33  ;;  %v3006_v33 = vor.u32 %v3659_v28, %v3003_v29  ;;  %v3133_v28 = vld [vmem:[#allocation7 + $0x258] sm:$0xf0]  ;;  %v3739_v29 = vld [vmem:[#allocation8 + $0x34] sm:$0xf] }
 0x1b5   :  { %v4179_v34 = vpop.f32.mrf.mxu0  ;;  %v4181_v35 = vpop.f32.mrf.mxu1  ;;  %2388 = vmatpush.bf16.msra.mxu0 %v3324_v55  ;;  %v3152_v55 = vor.u32 %v3697_v21, %v3149_v22  ;;  %v3320_v31 = vor.u32 %v3739_v29, %v3317_v30  ;;  %v3698_v21 = vld [vmem:[#allocation7 + $0x290] sm:$0xf]  ;;  %v3157_v22 = vld [vmem:[#allocation7 + $0x2b8] sm:$0xf0] }
 0x1b6   :  { %v3571_v30 = vld [vmem:[%s4341_s4 + $0x10] sm:$0xff] }
 0x1b9   :  { %2389 = vmatpush.bf16.msra.mxu0 %v3316_v32 }
 0x1ba   :  { %v3827_v36 = vpop.eup %3826 }
 0x1bb   :  { %v322_v38 = vadd.f32 1.0, %v3827_v36  ;;  %v3653_v36 = vld [vmem:[#allocation7 + $0x490] sm:$0xf] }
 0x1bd   :  { %v323_v41 = vmul.f32 %v322_v38, %v315_v37  ;;  %v1112_v42 = vpop.f32.mrf.mxu0  ;;  %v1125_v43 = vpop.f32.mrf.mxu1  ;;  %v2979_v37 = vld [vmem:[#allocation7 + $0x4b8] sm:$0xf0]  ;;  %v3307_v38 = vld [vmem:[#allocation8 + $0x20] sm:$0xf] }
 0x1be   :  { %v3308_v40 = vor.u32 %v3738_v39, %v3307_v38  ;;  %v2982_v43 = vor.u32 %v3653_v36, %v2979_v37  ;;  %v3689_v36 = vld [vmem:[#allocation7 + $0x1d8] sm:$0xf]  ;;  %v3117_v37 = vld [vmem:[#allocation7 + $0x200] sm:$0xf0]  ;;  %v3309_v39 = vld [vmem:[#allocation8 + $0x28] sm:$0xf0] }
 0x1bf   :  { %v340_v46 = vpack.c.bf16 %v323_v41, %v323_v41  ;;  %v3737_v38 = vld [vmem:[#allocation8 + $0x24] sm:$0xf] }
 0x1c0   :  { %2390 = vmatpush.bf16.msra.mxu0 %v3308_v40  ;;  %v3312_v40 = vor.u32 %v3737_v38, %v3309_v39 }
 0x1c1   :  { %401 = vmatmul.bf16.vlgmr.msra.gmra.mxu2 %v340_v46  ;;  %v2955_v46 = vld [vmem:[#allocation7 + $0x460] sm:$0xf0] }
 0x1c2   :  { %1179 = vmatpush.bf16.msra.mxu2 %v3022_v57  ;;  %v3647_v57 = vld [vmem:[#allocation7 + $0x438] sm:$0xf] }
 0x1c3   :  { %v2958_v51 = vor.u32 %v3647_v57, %v2955_v46 }
 0x1c5   :  { %v4183_v0 = vpop.f32.mrf.mxu0  ;;  %v4185_v53 = vpop.f32.mrf.mxu1 }
 0x1c6   :  { %1180 = vmatpush.bf16.msra.mxu2 %v2998_v50  ;;  %v3300_v50 = vor.u32 %v3736_v49, %v3299_v48  ;;  %v3120_v48 = vor.u32 %v3689_v36, %v3117_v37  ;;  %v3685_v49 = vld [vmem:[#allocation7 + $0x180] sm:$0xf]  ;;  %v3125_v36 = vld [vmem:[#allocation7 + $0x208] sm:$0xf0]  ;;  %v3570_v37 = vld [vmem:[%s4341_s4 + $0x8] sm:$0xff] }
 0x1c8   :  { %2391 = vmatpush.bf16.msra.mxu0 %v3300_v50  ;;  %v3101_v50 = vld [vmem:[#allocation7 + $0x1a8] sm:$0xf0] }
 0x1ca   :  { %1181 = vmatpush.bf16.msra.mxu2 %v2974_v56  ;;  %v2931_v56 = vld [vmem:[#allocation7 + $0x408] sm:$0xf0] }
 0x1cd   :  { %v1164_v2 = vpop.f32.mrf.mxu0  ;;  %v1177_v3 = vpop.f32.mrf.mxu1 }
 0x1ce   :  { %1182 = vmatpush.bf16.msra.mxu2 %v2950_v60  ;;  %v3292_v60 = vor.u32 %v3734_v59, %v3291_v58  ;;  %v3352_v2 = vor.u32 %v3747_v61, %v3349_v62  ;;  %v2934_v3 = vor.u32 %v3641_v52, %v2931_v56  ;;  %v3301_v52 = vld [vmem:[#allocation8 + $0x18] sm:$0xf0]  ;;  %v3681_v61 = vld [vmem:[#allocation7 + $0x128] sm:$0xf]  ;;  %v3085_v62 = vld [vmem:[#allocation7 + $0x150] sm:$0xf0] }
 0x1cf   :  { %v3088_v6 = vor.u32 %v3681_v61, %v3085_v62 }
 0x1d0   :  { %2392 = vmatpush.bf16.msra.mxu0 %v3292_v60  ;;  %v3104_v60 = vor.u32 %v3685_v49, %v3101_v50  ;;  %v3618_v49 = vld [vmem:[#allocation7 + $0x294] sm:$0xf0] }
 0x1d1   :  { %1135 = vmatmul.bf16.vlgmr.msrb.gmra.mxu2 %v4132_v45 }
 0x1d2   :  { %1183 = vmatpush.bf16.msra.mxu2 %v2926_v5  ;;  %v2907_v5 = vld [vmem:[#allocation7 + $0x3b0] sm:$0xf0] }
 0x1d3   :  { %v2910_v9 = vor.u32 %v3635_v4, %v2907_v5 }
 0x1d4   :  { %2437 = vmatpush.bf16.msrb.mxu0 %v3352_v2 }
 0x1d6   :  { %1184 = vmatpush.bf16.msra.mxu2 %v2902_v12  ;;  %v2883_v12 = vld [vmem:[#allocation7 + $0x358] sm:$0xf0] }
 0x1d7   :  { %v2886_v18 = vor.u32 %v3629_v11, %v2883_v12 }
 0x1d8   :  { %2438 = vmatpush.bf16.msrb.mxu0 %v3344_v7  ;;  %v3069_v7 = vld [vmem:[#allocation7 + $0xf8] sm:$0xf0] }
 0x1d9   :  { %v3072_v11 = vor.u32 %v3677_v10, %v3069_v7  ;;  %v3674_v7 = vld [vmem:[#allocation7 + $0x80] sm:$0xf] }
 0x1da   :  { %1185 = vmatpush.bf16.msra.mxu2 %v2878_v20  ;;  %v2859_v20 = vld [vmem:[#allocation7 + $0x300] sm:$0xf0] }
 0x1db   :  { %v2862_v25 = vor.u32 %v3623_v19, %v2859_v20  ;;  %v3037_v19 = vld [vmem:[#allocation7 + $0x48] sm:$0xf0]  ;;  %v3572_v20 = vld [vmem:[%s4341_s4 + $0x18] sm:$0xff] }
 0x1dc   :  { %2439 = vmatpush.bf16.msrb.mxu0 %v3336_v17  ;;  %v3056_v17 = vor.u32 %v3673_v14, %v3053_v15  ;;  %460 = vmatpush.bf16.msra.mxu3 %v3572_v20  ;;  %v2721_v20 = vld [vmem:[#allocation7 + $0x10c] sm:$0xf] }
 0x1de   :  { %1186 = vmatpush.bf16.msra.mxu2 %v2854_v26  ;;  %v4193_v26 = vld [vmem:[#allocation10 + $0x17] sm:$0xf] }
 0x1df   :  { %v1523_v32 = vperm.slane %v4193_v26, 0 }
 0x1e0   :  { %2440 = vmatpush.bf16.msrb.mxu0 %v3328_v24  ;;  %v3160_v24 = vor.u32 %v3698_v21, %v3157_v22  ;;  %461 = vmatpush.bf16.msra.mxu3 %v3571_v30  ;;  %v3594_v21 = vld [vmem:[#allocation7 + $0x134] sm:$0xf0]  ;;  %v3475_v22 = vld [vmem:[#allocation8 + $0x170] sm:$0xf]  ;;  %v3588_v30 = vld [vmem:[#allocation7 + $0xdc] sm:$0xf0] }
 0x1e1   :  { %1187 = vmatmul.bf16.vlgmr.msra.gmra.mxu2 %v4132_v45 }
 0x1e2   :  { %1231 = vmatpush.bf16.msrb.mxu2 %v3030_v27  ;;  %v3693_v27 = vld [vmem:[#allocation7 + $0x230] sm:$0xf] }
 0x1e4   :  { %2441 = vmatpush.bf16.msrb.mxu0 %v3320_v31  ;;  %462 = vmatpush.bf16.msra.mxu3 %v3570_v37  ;;  %v3776_v37 = vld [vmem:[#allocation8 + $0x154] sm:$0xf0] }
 0x1e5   :  { %v4189_v41 = vpop.f32.mrf.mxu0  ;;  %v4191_v42 = vpop.f32.mrf.mxu1 }
 0x1e6   :  { %1232 = vmatpush.bf16.msrb.mxu2 %v3006_v33  ;;  %v3136_v33 = vor.u32 %v3693_v27, %v3133_v28  ;;  %v3694_v27 = vld [vmem:[#allocation7 + $0x238] sm:$0xf]  ;;  %v3141_v28 = vld [vmem:[#allocation7 + $0x260] sm:$0xf0] }
 0x1e8   :  { %2442 = vmatpush.bf16.msrb.mxu0 %v3312_v40 }
 0x1ea   :  { %1233 = vmatpush.bf16.msrb.mxu2 %v2982_v43 }
 0x1ed   :  { %v1216_v63 = vpop.f32.mrf.mxu0  ;;  %v1229_v8 = vpop.f32.mrf.mxu1 }
 0x1ee   :  { %1234 = vmatpush.bf16.msrb.mxu2 %v2958_v51  ;;  %v3735_v51 = vld [vmem:[#allocation8 + $0x14] sm:$0xf]  ;;  %v3293_v63 = vld [vmem:[#allocation8 + $0x8] sm:$0xf0] }
 0x1ef   :  { %v3304_v58 = vor.u32 %v3735_v51, %v3301_v52  ;;  %v1525_v52 = vperm.slane %v4193_v26, 2 }
 0x1f1   :  { %2443 = vmatpush.bf16.msrb.mxu0 %v3304_v58  ;;  %v3093_v58 = vld [vmem:[#allocation7 + $0x158] sm:$0xf0] }
 0x1f2   :  { %1235 = vmatpush.bf16.msrb.mxu2 %v2934_v3 }
 0x1f6   :  { %1236 = vmatpush.bf16.msrb.mxu2 %v2910_v9 }
 0x1fa   :  { %1237 = vmatpush.bf16.msrb.mxu2 %v2886_v18  ;;  %v3669_v18 = vld [vmem:[#allocation7 + $0x20] sm:$0xf] }
 0x1fb   :  { %v3040_v23 = vor.u32 %v3669_v18, %v3037_v19  ;;  %v3045_v18 = vld [vmem:[#allocation7 + $0x50] sm:$0xf0] }
 0x1fe   :  { %1238 = vmatpush.bf16.msrb.mxu2 %v2862_v25 }
 0x201   :  { %1239 = vmatmul.bf16.vlgmr.msrb.gmra.mxu2 %v4132_v45  ;;  %v3733_v45 = vld [vmem:[#allocation8 + $0x4] sm:$0xf] }
 0x202   :  { %1877 = vmatpush.bf16.msra.mxu2 %v3152_v55  ;;  %v3296_v2 = vor.u32 %v3733_v45, %v3293_v63 }
 0x204   :  { %2444 = vmatpush.bf16.msrb.mxu0 %v3296_v2  ;;  %v3678_v2 = vld [vmem:[#allocation7 + $0xd8] sm:$0xf] }
 0x205   :  { %v1860_v43 = vpop.f32.mrf.mxu0  ;;  %v1873_v57 = vpop.f32.mrf.mxu1 }
 0x206   :  { %v1861_v46 = vadd.f32 %v1860_v43, %v1523_v32  ;;  %1878 = vmatpush.bf16.msra.mxu2 %v3136_v33  ;;  %v3144_v32 = vor.u32 %v3694_v27, %v3141_v28  ;;  %v3690_v33 = vld [vmem:[#allocation7 + $0x1e0] sm:$0xf]  ;;  %v3686_v43 = vld [vmem:[#allocation7 + $0x188] sm:$0xf] }
 0x207   :  { %v3128_v40 = vor.u32 %v3690_v33, %v3125_v36  ;;  %v3467_v27 = vld [vmem:[#allocation8 + $0x160] sm:$0xf]  ;;  %v3778_v28 = vld [vmem:[#allocation8 + $0x164] sm:$0xf0]  ;;  %v3459_v36 = vld [vmem:[#allocation8 + $0x150] sm:$0xf] }
 0x208   :  { %v1874_v56 = vadd.f32 %v1873_v57, %v1861_v46  ;;  %v3109_v57 = vld [vmem:[#allocation7 + $0x1b0] sm:$0xf0]  ;;  %v3569_v46 = vld [vmem:[%s4341_s4] sm:$0xff]  ;;  %v3468_v33 = vor.u32 %v3778_v28, %v3467_v27 }
 0x209   :  { %v3112_v51 = vor.u32 %v3686_v43, %v3109_v57  ;;  %463 = vmatpush.bf16.msra.mxu3 %v3569_v46  ;;  %v3460_v43 = vor.u32 %v3776_v37, %v3459_v36  ;;  %v3451_v57 = vld [vmem:[#allocation8 + $0x140] sm:$0xf]  ;;  %v2825_v37 = vld [vmem:[#allocation7 + $0x274] sm:$0xf] }
 0x20a   :  { %v1959_v59 = vmul.f32 0.044715, %v1874_v56  ;;  %1879 = vmatpush.bf16.msra.mxu2 %v3120_v48  ;;  %v1955_v25 = vmul.f32 0.5, %v1874_v56  ;;  %v2817_v48 = vld [vmem:[#allocation7 + $0x26c] sm:$0xf] }
 0x20b   :  { %v2818_v50 = vor.u32 %v3618_v49, %v2817_v48  ;;  %v3774_v48 = vld [vmem:[#allocation8 + $0x144] sm:$0xf0]  ;;  %v2649_v49 = vld [vmem:[#allocation7 + $0x4] sm:$0xf] }
 0x20c   :  { %v1963_v8 = vmul.f32 %v1959_v59, %v1874_v56  ;;  %v2793_v59 = vld [vmem:[#allocation7 + $0x214] sm:$0xf] }
 0x20d   :  { %v1862_v3 = vpop.f32.mrf.mxu0  ;;  %v1875_v4 = vpop.f32.mrf.mxu1  ;;  %1088 = vmatpush.bf16.msrb.mxu3 %v2818_v50  ;;  %v3576_v50 = vld [vmem:[#allocation7 + $0x2c] sm:$0xf0] }
 0x20e   :  { %v1967_v5 = vmul.f32 %v1963_v8, %v1874_v56  ;;  %1880 = vmatpush.bf16.msra.mxu2 %v3104_v60  ;;  %v3612_v60 = vld [vmem:[#allocation7 + $0x23c] sm:$0xf0]  ;;  %v3077_v3 = vld [vmem:[#allocation7 + $0x100] sm:$0xf0]  ;;  %v2769_v4 = vld [vmem:[#allocation7 + $0x1bc] sm:$0xf] }
 0x20f   :  { %v2794_v45 = vor.u32 %v3612_v60, %v2793_v59  ;;  %v3080_v10 = vor.u32 %v3678_v2, %v3077_v3  ;;  %v3772_v59 = vld [vmem:[#allocation8 + $0x134] sm:$0xf0]  ;;  %v3812_v60 = vld [vmem:[#allocation10 + $0x5] ss:$0 sm:$0xff]  ;;  %v3427_v3 = vld [vmem:[#allocation8 + $0x110] sm:$0xf] }
 0x210   :  { %v1971_v9 = vadd.f32 %v1967_v5, %v1874_v56  ;;  %v3682_v56 = vld [vmem:[#allocation7 + $0x130] sm:$0xf]  ;;  %v3606_v5 = vld [vmem:[#allocation7 + $0x1e4] sm:$0xf0] }
 0x211   :  { %v3096_v63 = vor.u32 %v3682_v56, %v3093_v58  ;;  %1089 = vmatpush.bf16.msrb.mxu3 %v2794_v45  ;;  %v3443_v58 = vld [vmem:[#allocation8 + $0x130] sm:$0xf] }
 0x212   :  { %1881 = vmatpush.bf16.msra.mxu2 %v3088_v6  ;;  %v1975_v12 = vmul.f32 0.7978846, %v1971_v9  ;;  %v2770_v6 = vor.u32 %v3606_v5, %v2769_v4  ;;  %v3061_v9 = vld [vmem:[#allocation7 + $0xa8] sm:$0xf0]  ;;  %v3768_v4 = vld [vmem:[#allocation8 + $0x114] sm:$0xf0] }
 0x213   :  { %v3064_v15 = vor.u32 %v3674_v7, %v3061_v9  ;;  %v3428_v7 = vor.u32 %v3768_v4, %v3427_v3  ;;  %v3419_v9 = vld [vmem:[#allocation8 + $0x100] sm:$0xf]  ;;  %v2753_v4 = vld [vmem:[#allocation7 + $0x16c] sm:$0xf] }
 0x214   :  { %3828 = vtanh.f32 %v1975_v12  ;;  %v3600_v12 = vld [vmem:[#allocation7 + $0x18c] sm:$0xf0] }
 0x215   :  { %1090 = vmatpush.bf16.msrb.mxu3 %v2770_v6 }
 0x216   :  { %1882 = vmatpush.bf16.msra.mxu2 %v3072_v11  ;;  %v2745_v11 = vld [vmem:[#allocation7 + $0x164] sm:$0xf] }
 0x217   :  { %v2746_v14 = vor.u32 %v3600_v12, %v2745_v11  ;;  %v3766_v11 = vld [vmem:[#allocation8 + $0x104] sm:$0xf0] }
 0x219   :  { %1091 = vmatpush.bf16.msrb.mxu3 %v2746_v14 }
 0x21a   :  { %v3829_v54 = vpop.eup %3828  ;;  %1883 = vmatpush.bf16.msra.mxu2 %v3056_v17  ;;  %v3670_v17 = vld [vmem:[#allocation7 + $0x28] sm:$0xf] }
 0x21b   :  { %v1983_v55 = vadd.f32 1.0, %v3829_v54  ;;  %v3780_v54 = vld [vmem:[#allocation8 + $0x174] sm:$0xf0] }
 0x21d   :  { %v1987_v29 = vmul.f32 %v1983_v55, %v1955_v25  ;;  %v3476_v55 = vor.u32 %v3780_v54, %v3475_v22  ;;  %v3420_v22 = vor.u32 %v3766_v11, %v3419_v9 }
 0x21e   :  { %1884 = vmatpush.bf16.msra.mxu2 %v3040_v23  ;;  %v2722_v23 = vor.u32 %v3594_v21, %v2721_v20 }
 0x21f   :  { %v2055_v31 = vpack.c.bf16 %v1987_v29, %v1987_v29  ;;  %v2697_v29 = vld [vmem:[#allocation7 + $0xb4] sm:$0xf] }
 0x220   :  { %1092 = vmatpush.bf16.msrb.mxu3 %v2722_v23 }
 0x221   :  { %1885 = vmatmul.bf16.vlgmr.msra.gmra.mxu2 %v4163_v13  ;;  %2393 = vmatmul.bf16.vlgmr.msra.gmra.mxu0 %v2055_v31 }
 0x222   :  { %1929 = vmatpush.bf16.msrb.mxu2 %v3160_v24  ;;  %v3048_v24 = vor.u32 %v3670_v17, %v3045_v18  ;;  %v3779_v17 = vld [vmem:[#allocation8 + $0x174] sm:$0xf]  ;;  %v3477_v18 = vld [vmem:[#allocation8 + $0x178] sm:$0xf0] }
 0x223   :  { %v3480_v54 = vor.u32 %v3779_v17, %v3477_v18  ;;  %v3595_v17 = vld [vmem:[#allocation7 + $0x13c] sm:$0xf0]  ;;  %v3765_v18 = vld [vmem:[#allocation8 + $0x104] sm:$0xf] }
 0x225   :  { %v1912_v38 = vpop.f32.mrf.mxu0  ;;  %v1925_v39 = vpop.f32.mrf.mxu1 }
 0x226   :  { %1930 = vmatpush.bf16.msrb.mxu2 %v3144_v32  ;;  %v1913_v8 = vadd.f32 %v1912_v38, %v1525_v52  ;;  %v2673_v38 = vld [vmem:[#allocation7 + $0x5c] sm:$0xf]  ;;  %v3452_v52 = vor.u32 %v3774_v48, %v3451_v57 }
 0x228   :  { %v4211_v26 = vadd.f32 %v1925_v39, %v1913_v8  ;;  %v3582_v39 = vld [vmem:[#allocation7 + $0x84] sm:$0xf0] }
 0x22a   :  { %1931 = vmatpush.bf16.msrb.mxu2 %v3128_v40  ;;  %v1961_v19 = vmul.f32 0.044715, %v4211_v26  ;;  %v2674_v40 = vor.u32 %v3582_v39, %v2673_v38  ;;  %v1957_v20 = vmul.f32 0.5, %v4211_v26  ;;  %v3619_v38 = vld [vmem:[#allocation7 + $0x29c] sm:$0xf0] }
 0x22c   :  { %v1965_v25 = vmul.f32 %v1961_v19, %v4211_v26 }
 0x22d   :  { %v1914_v61 = vpop.f32.mrf.mxu0  ;;  %v1927_v62 = vpop.f32.mrf.mxu1 }
 0x22e   :  { %1932 = vmatpush.bf16.msrb.mxu2 %v3112_v51  ;;  %v1969_v32 = vmul.f32 %v1965_v25, %v4211_v26  ;;  %v2650_v51 = vor.u32 %v3576_v50, %v2649_v49  ;;  %v3435_v61 = vld [vmem:[#allocation8 + $0x120] sm:$0xf]  ;;  %v3770_v62 = vld [vmem:[#allocation8 + $0x124] sm:$0xf0]  ;;  %v3777_v25 = vld [vmem:[#allocation8 + $0x164] sm:$0xf] }
 0x22f   :  { %v3436_v8 = vor.u32 %v3770_v62, %v3435_v61  ;;  %v2801_v49 = vld [vmem:[#allocation7 + $0x21c] sm:$0xf]  ;;  %v2777_v61 = vld [vmem:[#allocation7 + $0x1c4] sm:$0xf]  ;;  %v3607_v62 = vld [vmem:[#allocation7 + $0x1ec] sm:$0xf0] }
 0x230   :  { %v1973_v46 = vadd.f32 %v1969_v32, %v4211_v26 }
 0x231   :  { %2445 = vmatmul.bf16.vlgmr.msrb.gmra.mxu0 %v2055_v31  ;;  %v2698_v31 = vor.u32 %v3588_v30, %v2697_v29  ;;  %v3775_v30 = vld [vmem:[#allocation8 + $0x154] sm:$0xf] }
 0x232   :  { %1933 = vmatpush.bf16.msrb.mxu2 %v3096_v63  ;;  %v1977_v56 = vmul.f32 0.7978846, %v1973_v46  ;;  %v2826_v46 = vor.u32 %v3619_v38, %v2825_v37  ;;  %v3614_v37 = vld [vmem:[#allocation7 + $0x24c] sm:$0xf0] }
 0x233   :  { %1093 = vmatpush.bf16.msrb.mxu3 %v2698_v31  ;;  %v3461_v31 = vld [vmem:[#allocation8 + $0x158] sm:$0xf0] }
 0x234   :  { %3830 = vtanh.f32 %v1977_v56  ;;  %v3464_v36 = vor.u32 %v3775_v30, %v3461_v31  ;;  %v3445_v56 = vld [vmem:[#allocation8 + $0x138] sm:$0xf0]  ;;  %v3620_v31 = vld [vmem:[#allocation7 + $0x2a4] sm:$0xf0] }
 0x235   :  { %v2833_v30 = vld [vmem:[#allocation7 + $0x27c] sm:$0xf] }
 0x236   :  { %1934 = vmatpush.bf16.msrb.mxu2 %v3080_v10  ;;  %v4218_v10 = vld [vmem:[#allocation10 + $0x9] sm:$0x3f] }
 0x237   :  { %1094 = vmatpush.bf16.msrb.mxu3 %v2674_v40  ;;  %v597_v19 = vperm.slane %v4218_v10, 1  ;;  %v3773_v40 = vld [vmem:[#allocation8 + $0x144] sm:$0xf]  ;;  %v601_v38 = vperm.slane %v4218_v10, 5 }
 0x239   :  { %v1124_v27 = vadd.f32 %v4181_v35, %v597_v19  ;;  %v3421_v19 = vld [vmem:[#allocation8 + $0x108] sm:$0xf0] }
 0x23a   :  { %1935 = vmatpush.bf16.msrb.mxu2 %v3064_v15  ;;  %v3831_v5 = vpop.eup %3830 }
 0x23b   :  { %1095 = vmatpush.bf16.msrb.mxu3 %v2650_v51  ;;  %v1985_v12 = vadd.f32 1.0, %v3831_v5  ;;  %v3613_v51 = vld [vmem:[#allocation7 + $0x244] sm:$0xf0]  ;;  %v3601_v5 = vld [vmem:[#allocation7 + $0x194] sm:$0xf0] }
 0x23d   :  { %v1989_v23 = vmul.f32 %v1985_v12, %v1957_v20  ;;  %v2754_v12 = vor.u32 %v3601_v5, %v2753_v4  ;;  %v3424_v20 = vor.u32 %v3765_v18, %v3421_v19  ;;  %v1347_v4 = vpop.xlane.xlu1 %1346 }
 0x23e   :  { %1936 = vmatpush.bf16.msrb.mxu2 %v3048_v24 }
 0x23f   :  { %v4223_v28 = vpack.c.bf16 %v1989_v23, %v1989_v23 }
 0x241   :  { %1937 = vmatmul.bf16.vlgmr.msrb.gmra.mxu2 %v4163_v13  ;;  %v3444_v13 = vor.u32 %v3772_v59, %v3443_v58  ;;  %v599_v59 = vperm.slane %v4218_v10, 3 }
 0x242   :  { %2411 = vmatpush.bf16.msra.mxu2 %v3476_v55  ;;  %v3469_v55 = vld [vmem:[#allocation8 + $0x168] sm:$0xf0] }
 0x243   :  { %v3472_v29 = vor.u32 %v3777_v25, %v3469_v55  ;;  %v3583_v25 = vld [vmem:[#allocation7 + $0x8c] sm:$0xf0] }
 0x244   :  { %v402_v45 = vpop.f32.mrf.mxu2 }
 0x245   :  { %v403_v63 = vadd.f32 %v3812_v60, %v402_v45  ;;  %v2802_v60 = vor.u32 %v3613_v51, %v2801_v49  ;;  %v3769_v45 = vld [vmem:[#allocation8 + $0x124] sm:$0xf]  ;;  %v2737_v51 = vld [vmem:[#allocation7 + $0x11c] sm:$0xf] }
 0x246   :  { %2412 = vmatpush.bf16.msra.mxu2 %v3468_v33 }
 0x247   :  { %v407_v2 = vmul.f32 0.044715, %v403_v63  ;;  %v406_v39 = vmul.f32 0.5, %v403_v63 }
 0x249   :  { %v408_v6 = vmul.f32 %v407_v2, %v403_v63  ;;  %v2778_v2 = vor.u32 %v3607_v62, %v2777_v61  ;;  %v3584_v61 = vld [vmem:[#allocation7 + $0x94] sm:$0xf0] }
 0x24a   :  { %2413 = vmatpush.bf16.msra.mxu2 %v3460_v43  ;;  %v3453_v43 = vld [vmem:[#allocation8 + $0x148] sm:$0xf0] }
 0x24b   :  { %v409_v14 = vmul.f32 %v408_v6, %v403_v63  ;;  %v3456_v48 = vor.u32 %v3773_v40, %v3453_v43  ;;  %v3767_v6 = vld [vmem:[#allocation8 + $0x114] sm:$0xf]  ;;  %v3608_v40 = vld [vmem:[#allocation7 + $0x1f4] sm:$0xf0] }
 0x24c   :  { %v404_v15 = vpop.f32.mrf.mxu2 }
 0x24d   :  { %v410_v21 = vadd.f32 %v409_v14, %v403_v63  ;;  %v3437_v63 = vld [vmem:[#allocation8 + $0x128] sm:$0xf0]  ;;  %v2729_v15 = vld [vmem:[#allocation7 + $0x114] sm:$0xf] }
 0x24e   :  { %2414 = vmatpush.bf16.msra.mxu2 %v3452_v52  ;;  %v3771_v52 = vld [vmem:[#allocation8 + $0x134] sm:$0xf]  ;;  %v3440_v3 = vor.u32 %v3769_v45, %v3437_v63  ;;  %v3578_v63 = vld [vmem:[#allocation7 + $0x3c] sm:$0xf0] }
 0x24f   :  { %v411_v24 = vmul.f32 0.7978846, %v410_v21  ;;  %v2705_v21 = vld [vmem:[#allocation7 + $0xbc] sm:$0xf]  ;;  %v2665_v45 = vld [vmem:[#allocation7 + $0x14] sm:$0xf] }
 0x251   :  { %3832 = vtanh.f32 %v411_v24  ;;  %v2681_v24 = vld [vmem:[#allocation7 + $0x64] sm:$0xf] }
 0x252   :  { %2415 = vmatpush.bf16.msra.mxu2 %v3444_v13  ;;  %v3448_v13 = vor.u32 %v3771_v52, %v3445_v56  ;;  %v2682_v55 = vor.u32 %v3583_v25, %v2681_v24  ;;  %v3596_v52 = vld [vmem:[#allocation7 + $0x144] sm:$0xf0]  ;;  %3834 = vrcp.f32 %v1347_v4  ;;  %v3245_v4 = vld [vmem:[#allocation7 + $0x4c0] sm:$0xf0] }
 0x253   :  { %v2738_v56 = vor.u32 %v3596_v52, %v2737_v51 }
 0x254   :  { %v1136_v32 = vpop.f32.mrf.mxu2 }
 0x255   :  { %v4226_v26 = vadd.f32 %v1136_v32, %v1124_v27  ;;  %v2657_v27 = vld [vmem:[#allocation7 + $0xc] sm:$0xf] }
 0x256   :  { %2416 = vmatpush.bf16.msra.mxu2 %v3436_v8  ;;  %v1176_v8 = vadd.f32 %v4185_v53, %v599_v59  ;;  %v2730_v53 = vor.u32 %v3595_v17, %v2729_v15  ;;  %v3590_v59 = vld [vmem:[#allocation7 + $0xec] sm:$0xf0] }
 0x257   :  { %v3833_v33 = vpop.eup %3832 }
 0x258   :  { %v413_v35 = vadd.f32 1.0, %v3833_v33  ;;  %v2834_v33 = vor.u32 %v3620_v31, %v2833_v30  ;;  %v1381_v30 = vld [vmem:[%s4343_s6 + $0x28] sm:$0xff]  ;;  %v596_v31 = vperm.slane %v4218_v10, 0 }
 0x25a   :  { %2417 = vmatpush.bf16.msra.mxu2 %v3428_v7  ;;  %v414_v57 = vmul.f32 %v413_v35, %v406_v39  ;;  %v3429_v7 = vld [vmem:[#allocation8 + $0x118] sm:$0xf0]  ;;  %v2785_v35 = vld [vmem:[#allocation7 + $0x1cc] sm:$0xf] }
 0x25b   :  { %v3432_v14 = vor.u32 %v3767_v6, %v3429_v7  ;;  %v2786_v43 = vor.u32 %v3608_v40, %v2785_v35  ;;  %v3835_v7 = vpop.eup %3834 }
 0x25c   :  { %v423_v50 = vpack.c.bf16 %v414_v57, %v414_v57  ;;  %v1138_v58 = vpop.f32.mrf.mxu2  ;;  %v2761_v57 = vld [vmem:[#allocation7 + $0x174] sm:$0xf] }
 0x25d   :  { %v2713_v58 = vld [vmem:[#allocation7 + $0xc4] sm:$0xf] }
 0x25e   :  { %2418 = vmatpush.bf16.msra.mxu2 %v3420_v22  ;;  %2646 = vmatmul.msk.bf16.vlgmr.msra.gmra.mxu3 %vm452_vm5, %v423_v50  ;;  %v3589_v22 = vld [vmem:[#allocation7 + $0xe4] sm:$0xf0] }
 0x25f   :  { %1140 = vmatpush.bf16.msra.mxu3 %v2826_v46  ;;  %v2706_v23 = vor.u32 %v3589_v22, %v2705_v21  ;;  %v3602_v46 = vld [vmem:[#allocation7 + $0x19c] sm:$0xf0] }
 0x260   :  { %v2762_v50 = vor.u32 %v3602_v46, %v2761_v57  ;;  %v3261_v57 = vld [vmem:[#allocation7 + $0x518] sm:$0xf0] }
 0x261   :  { %2419 = vmatmul.bf16.vlgmr.msra.gmra.mxu2 %v4223_v28 }
 0x262   :  { %2463 = vmatpush.bf16.msrb.mxu2 %v3480_v54 }
 0x263   :  { %1141 = vmatpush.bf16.msra.mxu3 %v2802_v60 }
 0x264   :  { %v1188_v9 = vpop.f32.mrf.mxu2 }
 0x265   :  { %v4231_v11 = vadd.f32 %v1188_v9, %v1176_v8  ;;  %v2666_v8 = vor.u32 %v3578_v63, %v2665_v45 }
 0x266   :  { %2464 = vmatpush.bf16.msrb.mxu2 %v3472_v29  ;;  %v3577_v29 = vld [vmem:[#allocation7 + $0x34] sm:$0xf0] }
 0x267   :  { %1142 = vmatpush.bf16.msra.mxu3 %v2778_v2  ;;  %v2658_v32 = vor.u32 %v3577_v29, %v2657_v27  ;;  %v1350_v2 = vld [vmem:[%s4343_s6] sm:$0xff]  ;;  %v1382_v29 = vld [vmem:[%s4343_s6 + $0x38] sm:$0xff] }
 0x26a   :  { %2465 = vmatpush.bf16.msrb.mxu2 %v3464_v36  ;;  %v2809_v36 = vld [vmem:[#allocation7 + $0x224] sm:$0xf] }
 0x26b   :  { %1143 = vmatpush.bf16.msra.mxu3 %v2754_v12  ;;  %v2810_v39 = vor.u32 %v3614_v37, %v2809_v36  ;;  %v3277_v36 = vld [vmem:[#allocation7 + $0x570] sm:$0xf0]  ;;  %v1380_v37 = vld [vmem:[%s4343_s6 + $0x18] sm:$0xff] }
 0x26c   :  { %v1190_v54 = vpop.f32.mrf.mxu2 }
 0x26e   :  { %2466 = vmatpush.bf16.msrb.mxu2 %v3456_v48  ;;  %1096 = vmatmul.bf16.vlgmr.msrb.gmra.mxu3 %v4128_v44 }
 0x26f   :  { %1144 = vmatpush.bf16.msra.mxu3 %v2730_v53 }
 0x272   :  { %2467 = vmatpush.bf16.msrb.mxu2 %v3448_v13  ;;  %v2689_v13 = vld [vmem:[#allocation7 + $0x6c] sm:$0xf] }
 0x273   :  { %1145 = vmatpush.bf16.msra.mxu3 %v2706_v23  ;;  %v2690_v62 = vor.u32 %v3584_v61, %v2689_v13  ;;  %v1251_v23 = vmul.f32 0.044715, %v4226_v26 }
 0x276   :  { %2468 = vmatpush.bf16.msrb.mxu2 %v3440_v3 }
 0x277   :  { %1146 = vmatpush.bf16.msra.mxu3 %v2682_v55 }
 0x27a   :  { %2469 = vmatpush.bf16.msrb.mxu2 %v3432_v14  ;;  %v1349_v14 = vmul.f32 %v3835_v7, %v4173_v1  ;;  %v1257_v1 = vmul.f32 %v1251_v23, %v4226_v26 }
 0x27b   :  { %1147 = vmatpush.bf16.msra.mxu3 %v2658_v32 }
 0x27c   :  { %v1263_v32 = vmul.f32 %v1257_v1, %v4226_v26  ;;  %v3213_v1 = vld [vmem:[#allocation7 + $0x410] sm:$0xf0] }
 0x27e   :  { %2470 = vmatpush.bf16.msrb.mxu2 %v3424_v20  ;;  %1148 = vmatmul.bf16.vlgmr.msra.gmra.mxu3 %v4128_v44 }
 0x27f   :  { %1192 = vmatpush.bf16.msrb.mxu3 %v2834_v33  ;;  %v3729_v33 = vld [vmem:[#allocation7 + $0x548] sm:$0xf] }
 0x280   :  { %v3280_v35 = vor.u32 %v3729_v33, %v3277_v36  ;;  %v3709_v33 = vld [vmem:[#allocation7 + $0x390] sm:$0xf] }
 0x281   :  { %2471 = vmatmul.bf16.vlgmr.msrb.gmra.mxu2 %v4223_v28  ;;  %v1228_v28 = vadd.f32 %v4191_v42, %v601_v38  ;;  %v2714_v42 = vor.u32 %v3590_v59, %v2713_v58  ;;  %v1253_v59 = vmul.f32 0.044715, %v4231_v11 }
 0x283   :  { %1193 = vmatpush.bf16.msrb.mxu3 %v2810_v39  ;;  %v1379_v39 = vld [vmem:[%s4343_s6 + $0x8] sm:$0xff] }
 0x284   :  { %v1240_v48 = vpop.f32.mrf.mxu2 }
 0x285   :  { %v4238_v49 = vadd.f32 %v1240_v48, %v1228_v28  ;;  %v1269_v28 = vadd.f32 %v1263_v32, %v4226_v26 }
 0x287   :  { %1194 = vmatpush.bf16.msrb.mxu3 %v2786_v43  ;;  %v3725_v43 = vld [vmem:[#allocation7 + $0x4f0] sm:$0xf] }
 0x288   :  { %v3264_v58 = vor.u32 %v3725_v43, %v3261_v57  ;;  %v3705_v57 = vld [vmem:[#allocation7 + $0x338] sm:$0xf] }
 0x28b   :  { %1195 = vmatpush.bf16.msrb.mxu3 %v2762_v50 }
 0x28c   :  { %v1242_v60 = vpop.f32.mrf.mxu2 }
 0x28f   :  { %1196 = vmatpush.bf16.msrb.mxu3 %v2738_v56  ;;  %v3814_v56 = vld [vmem:[#allocation10 + $0x7] ss:$0 sm:$0xff] }
 0x293   :  { %1197 = vmatpush.bf16.msrb.mxu3 %v2714_v42  ;;  %v1275_v42 = vmul.f32 0.7978846, %v1269_v28 }
 0x297   :  { %1198 = vmatpush.bf16.msrb.mxu3 %v2690_v62 }
 0x29b   :  { %1199 = vmatpush.bf16.msrb.mxu3 %v2666_v8 }
 0x29e   :  { %v4243_v3 = vpop.f32.mrf.mxu0  ;;  %1200 = vmatmul.bf16.vlgmr.msrb.gmra.mxu3 %v4128_v44  ;;  %v3813_v44 = vld [vmem:[#allocation10 + $0x6] ss:$0 sm:$0xff] }
 0x29f   :  { %1373 = vmatpush.msra.mxu3 %v1350_v2  ;;  %v3721_v2 = vld [vmem:[#allocation7 + $0x498] sm:$0xf] }
 0x2a0   :  { %v3248_v7 = vor.u32 %v3721_v2, %v3245_v4  ;;  %v600_v4 = vperm.slane %v4218_v10, 4 }
 0x2a1   :  { %1403 = vmatpush.msrb.mxu3 %v1382_v29 }
 0x2a3   :  { %1404 = vmatpush.msrb.mxu3 %v1381_v30 }
 0x2a4   :  { %v4246_v5 = vpop.f32.mrf.mxu2 }
 0x2a5   :  { %1405 = vmatpush.msrb.mxu3 %v1380_v37 }
 0x2a6   :  { %v2396_v6 = vpop.f32.mrf.mxu0 }
 0x2a7   :  { %1406 = vmatpush.msrb.mxu3 %v1379_v39  ;;  %v3197_v39 = vld [vmem:[#allocation7 + $0x3b8] sm:$0xf0] }
 0x2ac   :  { %v1888_v9 = vpop.f32.mrf.mxu2 }
 0x2ae   :  { %v4248_v12 = vpop.f32.mrf.mxu0  ;;  %3031 = vmatmul.msk.f32.vlgmr.msra.gmra.mxu3 %vm1338_vm1, %v1349_v14  ;;  %v598_v14 = vperm.slane %v4218_v10, 2  ;;  %v3815_v10 = vld [vmem:[#allocation10 + $0xf] ss:$0 sm:$0xff] }
 0x2af   :  { %1890 = vmatpush.bf16.msra.mxu3 %v3280_v35 }
 0x2b3   :  { %1891 = vmatpush.bf16.msra.mxu3 %v3264_v58  ;;  %v3165_v58 = vld [vmem:[#allocation7 + $0x308] sm:$0xf0] }
 0x2b6   :  { %v2448_v15 = vpop.f32.mrf.mxu0 }
 0x2b7   :  { %1892 = vmatpush.bf16.msra.mxu3 %v3248_v7 }
 0x2c4   :  { %v4252_v17 = vpop.f32.mrf.mxu2 }
 0x2cc   :  { %v1940_v18 = vpop.f32.mrf.mxu2 }
 0x2e1   :  { %v465_v20 = vpop.f32.mrf.mxu3 }
 0x2e2   :  { %v466_v21 = vadd.f32 %v3813_v44, %v465_v20  ;;  %v3717_v44 = vld [vmem:[#allocation7 + $0x440] sm:$0xf] }
 0x2e4   :  { %v4254_v19 = vpop.f32.mrf.mxu2  ;;  %v470_v22 = vmul.f32 0.044715, %v466_v21  ;;  %v469_v51 = vmul.f32 0.5, %v466_v21 }
 0x2e6   :  { %v471_v54 = vmul.f32 %v470_v22, %v466_v21 }
 0x2e8   :  { %v472_v24 = vmul.f32 %v471_v54, %v466_v21 }
 0x2e9   :  { %v467_v25 = vpop.f32.mrf.mxu3 }
 0x2ea   :  { %v473_v55 = vadd.f32 %v472_v24, %v466_v21  ;;  %v1245_v24 = vmul.f32 0.5, %v4226_v26 }
 0x2ec   :  { %v2422_v53 = vpop.f32.mrf.mxu2  ;;  %v474_v27 = vmul.f32 0.7978846, %v473_v55  ;;  %v3713_v55 = vld [vmem:[#allocation7 + $0x3e8] sm:$0xf] }
 0x2ed   :  { %v3229_v53 = vld [vmem:[#allocation7 + $0x468] sm:$0xf0]  ;;  %v3216_v29 = vor.u32 %v3713_v55, %v3213_v1 }
 0x2ee   :  { %3836 = vtanh.f32 %v474_v27  ;;  %v3232_v21 = vor.u32 %v3717_v44, %v3229_v53 }
 0x2ef   :  { %3838 = vtanh.f32 %v1275_v42  ;;  %v1255_v42 = vmul.f32 0.044715, %v4238_v49 }
 0x2f0   :  { %1893 = vmatpush.bf16.msra.mxu3 %v3232_v21 }
 0x2f1   :  { %v1097_v38 = vpop.f32.mrf.mxu3 }
 0x2f2   :  { %v1098_v40 = vadd.f32 %v1097_v38, %v596_v31 }
 0x2f4   :  { %v3837_v46 = vpop.eup %3836  ;;  %v1111_v48 = vadd.f32 %v4179_v34, %v1098_v40  ;;  %v1259_v34 = vmul.f32 %v1253_v59, %v4231_v11  ;;  %1894 = vmatpush.bf16.msra.mxu3 %v3216_v29  ;;  %v3200_v40 = vor.u32 %v3709_v33, %v3197_v39  ;;  %v1249_v29 = vmul.f32 0.5, %v4238_v49 }
 0x2f5   :  { %v476_v52 = vadd.f32 1.0, %v3837_v46  ;;  %v3839_v20 = vpop.eup %3838  ;;  %v3181_v46 = vld [vmem:[#allocation7 + $0x360] sm:$0xf0] }
 0x2f6   :  { %v1250_v60 = vmul.f32 0.044715, %v1111_v48  ;;  %v1265_v18 = vmul.f32 %v1259_v34, %v4231_v11  ;;  %v1287_v25 = vadd.f32 1.0, %v3839_v20  ;;  %v1244_v36 = vmul.f32 0.5, %v1111_v48 }
 0x2f7   :  { %v477_v13 = vmul.f32 %v476_v52, %v469_v51  ;;  %v3184_v52 = vor.u32 %v3705_v57, %v3181_v46  ;;  %v3718_v57 = vld [vmem:[#allocation7 + $0x448] sm:$0xf]  ;;  %v3237_v46 = vld [vmem:[#allocation7 + $0x470] sm:$0xf0] }
 0x2f8   :  { %v1256_v61 = vmul.f32 %v1250_v60, %v1111_v48  ;;  %v1271_v23 = vadd.f32 %v1265_v18, %v4231_v11  ;;  %v4284_v38 = vmul.f32 %v1287_v25, %v1245_v24  ;;  %1895 = vmatpush.bf16.msra.mxu3 %v3200_v40  ;;  %v3730_v24 = vld [vmem:[#allocation7 + $0x550] sm:$0xf]  ;;  %v3285_v25 = vld [vmem:[#allocation7 + $0x578] sm:$0xf0]  ;;  %v3722_v40 = vld [vmem:[#allocation7 + $0x4a0] sm:$0xf] }
 0x2f9   :  { %v1099_v62 = vpop.f32.mrf.mxu3  ;;  %v482_v45 = vmul.f32 %v3814_v56, %v477_v13  ;;  %v3701_v56 = vld [vmem:[#allocation7 + $0x2e0] sm:$0xf]  ;;  %v1247_v13 = vmul.f32 0.5, %v4231_v11 }
 0x2fa   :  { %v1262_v63 = vmul.f32 %v1256_v61, %v1111_v48  ;;  %v1277_v32 = vmul.f32 0.7978846, %v1271_v23  ;;  %v3168_v60 = vor.u32 %v3701_v56, %v3165_v58  ;;  %v3710_v58 = vld [vmem:[#allocation7 + $0x398] sm:$0xf] }
 0x2fb   :  { %v483_v8 = vsel %vm452_vm5, %v482_v45, 0.0 }
 0x2fc   :  { %484 = vadd.xlane.f32.xlu1 %v483_v8  ;;  %v1268_v6 = vadd.f32 %v1262_v63, %v1111_v48  ;;  %1896 = vmatpush.bf16.msra.mxu3 %v3184_v52  ;;  %v1261_v8 = vmul.f32 %v1255_v42, %v4238_v49  ;;  %v3714_v52 = vld [vmem:[#allocation7 + $0x3f0] sm:$0xf]  ;;  %v3706_v42 = vld [vmem:[#allocation7 + $0x340] sm:$0xf] }
 0x2fe   :  { %v1274_v15 = vmul.f32 0.7978846, %v1268_v6  ;;  %v1267_v7 = vmul.f32 %v1261_v8, %v4238_v49  ;;  %v3411_v8 = vld [vmem:[#allocation8 + $0xf0] sm:$0xf] }
 0x300   :  { %3840 = vtanh.f32 %v1274_v15  ;;  %1897 = vmatpush.bf16.msra.mxu3 %v3168_v60 }
 0x301   :  { %v1149_v22 = vpop.f32.mrf.mxu3  ;;  %3842 = vtanh.f32 %v1277_v32  ;;  %v3269_v32 = vld [vmem:[#allocation7 + $0x520] sm:$0xf0] }
 0x302   :  { %v1150_v54 = vadd.f32 %v1149_v22, %v598_v14  ;;  %v1273_v14 = vadd.f32 %v1267_v7, %v4238_v49 }
 0x304   :  { %v4274_v50 = vpop.f32.mrf.mxu2  ;;  %v1163_v27 = vadd.f32 %v4183_v0, %v1150_v54  ;;  %v1279_v44 = vmul.f32 0.7978846, %v1273_v14 }
 0x306   :  { %v3841_v30 = vpop.eup %3840  ;;  %v1252_v31 = vmul.f32 0.044715, %v1163_v27  ;;  %v1246_v45 = vmul.f32 0.5, %v1163_v27 }
 0x307   :  { %v1286_v37 = vadd.f32 1.0, %v3841_v30  ;;  %v3843_v59 = vpop.eup %3842 }
 0x308   :  { %v1258_v35 = vmul.f32 %v1252_v31, %v1163_v27  ;;  %v1289_v61 = vadd.f32 1.0, %v3843_v59  ;;  %v3726_v31 = vld [vmem:[#allocation7 + $0x4f8] sm:$0xf]  ;;  %v3205_v59 = vld [vmem:[#allocation7 + $0x3c0] sm:$0xf0] }
 0x309   :  { %v1151_v28 = vpop.f32.mrf.mxu3  ;;  %v4286_v26 = vmul.f32 %v1286_v37, %v1244_v36  ;;  %v3272_v36 = vor.u32 %v3726_v31, %v3269_v32  ;;  %v3208_v60 = vor.u32 %v3710_v58, %v3205_v59  ;;  %v3371_v32 = vld [vmem:[#allocation8 + $0xa0] sm:$0xf]  ;;  %v3523_v58 = vld [vmem:[#allocation8 + $0x1d0] sm:$0xf]  ;;  %v3792_v59 = vld [vmem:[#allocation8 + $0x1d4] sm:$0xf0] }
 0x30a   :  { %v1264_v43 = vmul.f32 %v1258_v35, %v1163_v27  ;;  %v4292_v34 = vmul.f32 %v1289_v61, %v1247_v13  ;;  %v3253_v28 = vld [vmem:[#allocation7 + $0x4c8] sm:$0xf0] }
 0x30b   :  { %v1298_v0 = vadd.f32 %v4284_v38, %v4286_v26  ;;  %v3189_v13 = vld [vmem:[#allocation7 + $0x368] sm:$0xf0] }
 0x30c   :  { %v2474_v9 = vpop.f32.mrf.mxu2  ;;  %v1270_v51 = vadd.f32 %v1264_v43, %v1163_v27  ;;  %v3288_v27 = vor.u32 %v3730_v24, %v3285_v25  ;;  %v3192_v61 = vor.u32 %v3706_v42, %v3189_v13  ;;  %v3524_v42 = vor.u32 %v3792_v59, %v3523_v58  ;;  %v3761_v13 = vld [vmem:[#allocation8 + $0xe4] sm:$0xf] }
 0x30d   :  { %1299 = vadd.xlane.f32.xlu2 %v1298_v0  ;;  %v3256_v0 = vor.u32 %v3722_v40, %v3253_v28  ;;  %v3752_v40 = vld [vmem:[#allocation8 + $0x94] sm:$0xf0] }
 0x30e   :  { %v1276_v48 = vmul.f32 0.7978846, %v1270_v51  ;;  %v3240_v51 = vor.u32 %v3718_v57, %v3237_v46  ;;  %v3355_v46 = vld [vmem:[#allocation8 + $0x80] sm:$0xf] }
 0x310   :  { %3844 = vtanh.f32 %v1276_v48  ;;  %v3221_v48 = vld [vmem:[#allocation7 + $0x418] sm:$0xf0] }
 0x311   :  { %3846 = vtanh.f32 %v1279_v44  ;;  %v3224_v56 = vor.u32 %v3714_v52, %v3221_v48  ;;  %v3763_v52 = vld [vmem:[#allocation8 + $0xf4] sm:$0xf] }
 0x316   :  { %v3845_v62 = vpop.eup %3844 }
 0x317   :  { %v1288_v63 = vadd.f32 1.0, %v3845_v62  ;;  %v3847_v23 = vpop.eup %3846  ;;  %v3702_v62 = vld [vmem:[#allocation7 + $0x2e8] sm:$0xf] }
 0x319   :  { %v4295_v2 = vmul.f32 %v1288_v63, %v1246_v45  ;;  %v3173_v45 = vld [vmem:[#allocation7 + $0x310] sm:$0xf0] }
 0x31a   :  { %v3176_v63 = vor.u32 %v3702_v62, %v3173_v45  ;;  %v3515_v62 = vld [vmem:[#allocation8 + $0x1c0] sm:$0xf]  ;;  %v3790_v45 = vld [vmem:[#allocation8 + $0x1c4] sm:$0xf0] }
 0x31b   :  { %v1310_v6 = vadd.f32 %v4292_v34, %v4295_v2 }
 0x31d   :  { %1311 = vadd.xlane.f32.xlu2 %v1310_v6 }
 0x321   :  { %v1201_v9 = vpop.f32.mrf.mxu3 }
 0x322   :  { %v1202_v11 = vadd.f32 %v1201_v9, %v600_v4  ;;  %v3764_v4 = vld [vmem:[#allocation8 + $0xf4] sm:$0xf0] }
 0x323   :  { %v3412_v6 = vor.u32 %v3764_v4, %v3411_v8  ;;  %v3759_v8 = vld [vmem:[#allocation8 + $0xd4] sm:$0xf]  ;;  %v3397_v4 = vld [vmem:[#allocation8 + $0xd8] sm:$0xf0] }
 0x324   :  { %v1215_v15 = vadd.f32 %v4189_v41, %v1202_v11  ;;  %v1291_v41 = vadd.f32 1.0, %v3847_v23 }
 0x325   :  { %2398 = vmatpush.bf16.msra.mxu1 %v3412_v6  ;;  %v3516_v6 = vor.u32 %v3790_v45, %v3515_v62 }
 0x326   :  { %v1254_v18 = vmul.f32 0.044715, %v1215_v15  ;;  %v1248_v37 = vmul.f32 0.5, %v1215_v15  ;;  %v4304_v35 = vmul.f32 %v1291_v41, %v1249_v29  ;;  %v3379_v41 = vld [vmem:[#allocation8 + $0xb0] sm:$0xf] }
 0x328   :  { %v1260_v53 = vmul.f32 %v1254_v18, %v1215_v15 }
 0x329   :  { %v1203_v20 = vpop.f32.mrf.mxu3 }
 0x32a   :  { %v1266_v21 = vmul.f32 %v1260_v53, %v1215_v15  ;;  %v3403_v53 = vld [vmem:[#allocation8 + $0xe0] sm:$0xf]  ;;  %v3762_v20 = vld [vmem:[#allocation8 + $0xe4] sm:$0xf0] }
 0x32c   :  { %v1272_v22 = vadd.f32 %v1266_v21, %v1215_v15  ;;  %v3404_v21 = vor.u32 %v3762_v20, %v3403_v53 }
 0x32e   :  { %v1278_v54 = vmul.f32 0.7978846, %v1272_v22  ;;  %2399 = vmatpush.bf16.msra.mxu1 %v3404_v21  ;;  %v3499_v21 = vld [vmem:[#allocation8 + $0x1a0] sm:$0xf] }
 0x330   :  { %3848 = vtanh.f32 %v1278_v54  ;;  %v3760_v54 = vld [vmem:[#allocation8 + $0xd4] sm:$0xf0] }
 0x331   :  { %v1375_v55 = vpop.f32.mrf.mxu3 }
 0x332   :  { %v1376_v1 = vadd.f32 %v3815_v10, %v1375_v55  ;;  %v3395_v10 = vld [vmem:[#allocation8 + $0xd0] sm:$0xf]  ;;  %v3387_v55 = vld [vmem:[#allocation8 + $0xc0] sm:$0xf] }
 0x334   :  { %v1378_v30 = vmax.f32 %v1376_v1, 0.0  ;;  %v3758_v1 = vld [vmem:[#allocation8 + $0xc4] sm:$0xf0] }
 0x335   :  { %v3388_v29 = vor.u32 %v3758_v1, %v3387_v55  ;;  %v4319_v55 = vld [vmem:[#allocation10 + $0x17] sm:$0xf] }
 0x336   :  { %v3849_v33 = vpop.eup %3848  ;;  %3032 = vmatmul.msk.f32.vlgmr.msrb.gmra.mxu3 %vm1387_vm6, %v1378_v30  ;;  %v3756_v30 = vld [vmem:[#allocation8 + $0xb4] sm:$0xf0]  ;;  %v1524_v1 = vperm.slane %v4319_v55, 1 }
 0x337   :  { %1942 = vmatpush.bf16.msrb.mxu3 %v3288_v27  ;;  %v1290_v39 = vadd.f32 1.0, %v3849_v33  ;;  %v3380_v31 = vor.u32 %v3756_v30, %v3379_v41  ;;  %v3754_v33 = vld [vmem:[#allocation8 + $0xa4] sm:$0xf0]  ;;  %v3784_v41 = vld [vmem:[#allocation8 + $0x194] sm:$0xf0] }
 0x339   :  { %v4306_v43 = vmul.f32 %v1290_v39, %v1248_v37  ;;  %v3363_v39 = vld [vmem:[#allocation8 + $0x90] sm:$0xf] }
 0x33a   :  { %v3364_v28 = vor.u32 %v3752_v40, %v3363_v39  ;;  %v3483_v39 = vld [vmem:[#allocation8 + $0x180] sm:$0xf]  ;;  %v3782_v40 = vld [vmem:[#allocation8 + $0x184] sm:$0xf0] }
 0x33b   :  { %1943 = vmatpush.bf16.msrb.mxu3 %v3272_v36  ;;  %v1323_v49 = vadd.f32 %v4304_v35, %v4306_v43  ;;  %v3372_v36 = vor.u32 %v3754_v33, %v3371_v32  ;;  %v3753_v32 = vld [vmem:[#allocation8 + $0xa4] sm:$0xf]  ;;  %v3373_v33 = vld [vmem:[#allocation8 + $0xa8] sm:$0xf0] }
 0x33d   :  { %1324 = vadd.xlane.f32.xlu0 %v1323_v49  ;;  %v3531_v49 = vld [vmem:[#allocation8 + $0x1e0] sm:$0xf] }
 0x33e   :  { %1898 = vmatmul.bf16.vlgmr.msra.gmra.mxu3 %v4165_v16 }
 0x33f   :  { %1944 = vmatpush.bf16.msrb.mxu3 %v3256_v0  ;;  %v3794_v0 = vld [vmem:[#allocation8 + $0x1e4] sm:$0xf0] }
 0x340   :  { %v3532_v57 = vor.u32 %v3794_v0, %v3531_v49  ;;  %v3484_v49 = vor.u32 %v3782_v40, %v3483_v39  ;;  %v3795_v0 = vld [vmem:[#allocation8 + $0x1f4] sm:$0xf] }
 0x343   :  { %1945 = vmatpush.bf16.msrb.mxu3 %v3240_v51  ;;  %v3750_v51 = vld [vmem:[#allocation8 + $0x84] sm:$0xf0] }
 0x344   :  { %v3356_v48 = vor.u32 %v3750_v51, %v3355_v46  ;;  %v3751_v46 = vld [vmem:[#allocation8 + $0x94] sm:$0xf] }
 0x347   :  { %1946 = vmatpush.bf16.msrb.mxu3 %v3224_v56  ;;  %v3413_v56 = vld [vmem:[#allocation8 + $0xf8] sm:$0xf0] }
 0x34b   :  { %1947 = vmatpush.bf16.msrb.mxu3 %v3208_v60  ;;  %v3416_v60 = vor.u32 %v3763_v52, %v3413_v56  ;;  %v3533_v56 = vld [vmem:[#allocation8 + $0x1e8] sm:$0xf0] }
 0x34f   :  { %1948 = vmatpush.bf16.msrb.mxu3 %v3192_v61  ;;  %v3405_v61 = vld [vmem:[#allocation8 + $0xe8] sm:$0xf0] }
 0x353   :  { %1949 = vmatpush.bf16.msrb.mxu3 %v3176_v63  ;;  %v3408_v63 = vor.u32 %v3761_v13, %v3405_v61 }
 0x356   :  { %1950 = vmatmul.bf16.vlgmr.msrb.gmra.mxu3 %v4165_v16 }
 0x380   :  { %v1300_v7 = vpop.xlane.xlu2 %1299 }
 0x381   :  { %v1301_v9 = vmul.f32 %v1300_v7, %v4100_v47  ;;  %v3507_v7 = vld [vmem:[#allocation8 + $0x1b0] sm:$0xf] }
 0x383   :  { %v1302_v11 = vsub.f32 %v4286_v26, %v1301_v9  ;;  %v1303_v14 = vsub.f32 %v4284_v38, %v1301_v9  ;;  %v3396_v26 = vor.u32 %v3760_v54, %v3395_v10  ;;  %v3788_v9 = vld [vmem:[#allocation8 + $0x1b4] sm:$0xf0] }
 0x385   :  { %v1304_v15 = vmul.f32 %v1302_v11, %v1302_v11  ;;  %v1305_v18 = vmul.f32 %v1303_v14, %v1303_v14  ;;  %2400 = vmatpush.bf16.msra.mxu1 %v3396_v26  ;;  %v3400_v11 = vor.u32 %v3759_v8, %v3397_v4  ;;  %v3508_v14 = vor.u32 %v3788_v9, %v3507_v7  ;;  %v3381_v26 = vld [vmem:[#allocation8 + $0xb8] sm:$0xf0]  ;;  %v3791_v4 = vld [vmem:[#allocation8 + $0x1d4] sm:$0xf] }
 0x387   :  { %v1306_v44 = vadd.f32 %v1305_v18, %v1304_v15  ;;  %v3817_v15 = vld [vmem:[#allocation10 + $0x10] ss:$0 sm:$0xff]  ;;  %v3757_v18 = vld [vmem:[#allocation8 + $0xc4] sm:$0xf] }
 0x389   :  { %1307 = vadd.xlane.f32.xlu0 %v1306_v44  ;;  %2401 = vmatpush.bf16.msra.mxu1 %v3388_v29  ;;  %v3389_v44 = vld [vmem:[#allocation8 + $0xc8] sm:$0xf0]  ;;  %v3491_v29 = vld [vmem:[#allocation8 + $0x190] sm:$0xf] }
 0x38a   :  { %v3392_v53 = vor.u32 %v3757_v18, %v3389_v44  ;;  %v3492_v30 = vor.u32 %v3784_v41, %v3491_v29  ;;  %v3787_v44 = vld [vmem:[#allocation8 + $0x1b4] sm:$0xf] }
 0x38d   :  { %2402 = vmatpush.bf16.msra.mxu1 %v3380_v31 }
 0x390   :  { %v1312_v22 = vpop.xlane.xlu2 %1311 }
 0x391   :  { %v1313_v16 = vmul.f32 %v1312_v22, %v4100_v47  ;;  %2403 = vmatpush.bf16.msra.mxu1 %v3372_v36  ;;  %v3786_v22 = vld [vmem:[#allocation8 + $0x1a4] sm:$0xf0] }
 0x392   :  { %v3500_v10 = vor.u32 %v3786_v22, %v3499_v21  ;;  %v3785_v21 = vld [vmem:[#allocation8 + $0x1a4] sm:$0xf]  ;;  %v3501_v22 = vld [vmem:[#allocation8 + $0x1a8] sm:$0xf0] }
 0x393   :  { %v1314_v23 = vsub.f32 %v4295_v2, %v1313_v16  ;;  %v1315_v24 = vsub.f32 %v4292_v34, %v1313_v16  ;;  %v3539_v2 = vld [vmem:[#allocation8 + $0x1f0] sm:$0xf]  ;;  %v3796_v34 = vld [vmem:[#allocation8 + $0x1f4] sm:$0xf0] }
 0x394   :  { %v3540_v37 = vor.u32 %v3796_v34, %v3539_v2  ;;  %v1887_v34 = vadd.f32 %v4246_v5, %v1524_v1  ;;  %v3749_v5 = vld [vmem:[#allocation8 + $0x84] sm:$0xf] }
 0x395   :  { %v1316_v25 = vmul.f32 %v1314_v23, %v1314_v23  ;;  %v1317_v38 = vmul.f32 %v1315_v24, %v1315_v24  ;;  %2404 = vmatpush.bf16.msra.mxu1 %v3364_v28  ;;  %v3818_v23 = vld [vmem:[#allocation10 + $0x11] ss:$0 sm:$0xff]  ;;  %v3755_v24 = vld [vmem:[#allocation8 + $0xb4] sm:$0xf] }
 0x396   :  { %2424 = vmatpush.bf16.msra.mxu3 %v3540_v37 }
 0x397   :  { %v1318_v27 = vadd.f32 %v1317_v38, %v1316_v25  ;;  %v3384_v38 = vor.u32 %v3755_v24, %v3381_v26  ;;  %v3783_v26 = vld [vmem:[#allocation8 + $0x194] sm:$0xf] }
 0x399   :  { %1319 = vadd.xlane.f32.xlu1 %v1318_v27  ;;  %2405 = vmatpush.bf16.msra.mxu1 %v3356_v48  ;;  %v3365_v48 = vld [vmem:[#allocation8 + $0x98] sm:$0xf0] }
 0x39a   :  { %2425 = vmatpush.bf16.msra.mxu3 %v3532_v57  ;;  %v3541_v57 = vld [vmem:[#allocation8 + $0x1f8] sm:$0xf0]  ;;  %v3368_v59 = vor.u32 %v3751_v46, %v3365_v48  ;;  %v3819_v48 = vld [vmem:[#allocation10 + $0x12] ss:$0 sm:$0xff] }
 0x39b   :  { %v3544_v52 = vor.u32 %v3795_v0, %v3541_v57  ;;  %v3816_v0 = vld [vmem:[#allocation10 + $0x8] ss:$0 sm:$0xff]  ;;  %v485_v57 = vpop.xlane.xlu1 %484 }
 0x39c   :  { %v490_v46 = vadd.f32 %v3816_v0, %v485_v57 }
 0x39d   :  { %2450 = vmatpush.bf16.msrb.mxu1 %v3416_v60  ;;  %v3357_v60 = vld [vmem:[#allocation8 + $0x88] sm:$0xf0] }
 0x39e   :  { %2426 = vmatpush.bf16.msra.mxu3 %v3524_v42  ;;  %v3360_v61 = vor.u32 %v3749_v5, %v3357_v60 }
 0x3a1   :  { %2451 = vmatpush.bf16.msrb.mxu1 %v3408_v63 }
 0x3a2   :  { %2427 = vmatpush.bf16.msra.mxu3 %v3516_v6  ;;  %v3525_v6 = vld [vmem:[#allocation8 + $0x1d8] sm:$0xf0] }
 0x3a3   :  { %v3528_v9 = vor.u32 %v3791_v4, %v3525_v6 }
 0x3a5   :  { %2452 = vmatpush.bf16.msrb.mxu1 %v3400_v11  ;;  %v3789_v11 = vld [vmem:[#allocation8 + $0x1c4] sm:$0xf] }
 0x3a6   :  { %2428 = vmatpush.bf16.msra.mxu3 %v3508_v14  ;;  %v3517_v14 = vld [vmem:[#allocation8 + $0x1c8] sm:$0xf0] }
 0x3a7   :  { %v3520_v18 = vor.u32 %v3789_v11, %v3517_v14 }
 0x3a9   :  { %2453 = vmatpush.bf16.msrb.mxu1 %v3392_v53  ;;  %v3509_v53 = vld [vmem:[#allocation8 + $0x1b8] sm:$0xf0] }
 0x3aa   :  { %2429 = vmatpush.bf16.msra.mxu3 %v3500_v10  ;;  %v1526_v10 = vperm.slane %v4319_v55, 3 }
 0x3ac   :  { %v1939_v1 = vadd.f32 %v4252_v17, %v1526_v10 }
 0x3ad   :  { %2454 = vmatpush.bf16.msrb.mxu1 %v3384_v38 }
 0x3ae   :  { %2430 = vmatpush.bf16.msra.mxu3 %v3492_v30  ;;  %v3781_v30 = vld [vmem:[#allocation8 + $0x184] sm:$0xf] }
 0x3b0   :  { %v1325_v20 = vpop.xlane.xlu0 %1324 }
 0x3b1   :  { %v1326_v25 = vmul.f32 %v1325_v20, %v4100_v47  ;;  %v3376_v47 = vor.u32 %v3753_v32, %v3373_v33  ;;  %v3512_v20 = vor.u32 %v3787_v44, %v3509_v53 }
 0x3b2   :  { %2431 = vmatpush.bf16.msra.mxu3 %v3484_v49 }
 0x3b3   :  { %v1327_v36 = vsub.f32 %v4306_v43, %v1326_v25  ;;  %v1328_v2 = vsub.f32 %v4304_v35, %v1326_v25  ;;  %2455 = vmatpush.bf16.msrb.mxu1 %v3376_v47  ;;  %v3793_v43 = vld [vmem:[#allocation8 + $0x1e4] sm:$0xf]  ;;  %v3493_v25 = vld [vmem:[#allocation8 + $0x198] sm:$0xf0] }
 0x3b4   :  { %v3536_v13 = vor.u32 %v3793_v43, %v3533_v56  ;;  %v4027_v43 = vmov 0  }
 0x3b5   :  { %v1329_v35 = vmul.f32 %v1327_v36, %v1327_v36  ;;  %v1330_v58 = vmul.f32 %v1328_v2, %v1328_v2  ;;  %3810 = vset.pattern.permute.xlu1 %v4027_v43  ;;  %3809 = vset.pattern.permute.xlu0 %v4027_v43 }
 0x3b6   :  { %2476 = vmatpush.bf16.msrb.mxu3 %v3544_v52 }
 0x3b7   :  { %2456 = vmatpush.bf16.msrb.mxu1 %v3368_v59  ;;  %v1331_v45 = vadd.f32 %v1330_v58, %v1329_v35 }
 0x3b9   :  { %v1408_v16 = vpop.f32.mrf.mxu3 }
 0x3ba   :  { %v1409_v54 = vadd.f32 %v3817_v15, %v1408_v16  ;;  %2477 = vmatpush.bf16.msrb.mxu3 %v3536_v13 }
 0x3bb   :  { %2457 = vmatpush.bf16.msrb.mxu1 %v3360_v61 }
 0x3bc   :  { %v1411_v27 = vmax.f32 %v1409_v54, 0.0  ;;  %v3504_v54 = vor.u32 %v3785_v21, %v3501_v22  ;;  %v2059_v22 = vld [vmem:[#allocation10 + $0x1b] sm:$0x3] }
 0x3bd   :  { %v2061_v10 = vperm.slane %v2059_v22, 0 }
 0x3be   :  { %v1416_v31 = vmul.f32 %v3818_v23, %v1411_v27  ;;  %2478 = vmatpush.bf16.msrb.mxu3 %v3528_v9  ;;  %v3496_v27 = vor.u32 %v3783_v26, %v3493_v25 }
 0x3c0   :  { %v1418_v37 = vsel %vm1417_vm7, %v1416_v31, 0.0  ;;  %v3485_v31 = vld [vmem:[#allocation8 + $0x188] sm:$0xf0] }
 0x3c1   :  { %v1899_v28 = vpop.f32.mrf.mxu3  ;;  %1419 = vadd.xlane.f32.xlu2 %v1418_v37  ;;  %v3488_v55 = vor.u32 %v3781_v30, %v3485_v31 }
 0x3c2   :  { %v1900_v51 = vadd.f32 %v1899_v28, %v1887_v34  ;;  %2479 = vmatpush.bf16.msrb.mxu3 %v3520_v18 }
 0x3c4   :  { %v1960_v42 = vmul.f32 0.044715, %v1900_v51  ;;  %v1956_v23 = vmul.f32 0.5, %v1900_v51 }
 0x3c6   :  { %v1964_v62 = vmul.f32 %v1960_v42, %v1900_v51  ;;  %2480 = vmatpush.bf16.msrb.mxu3 %v3512_v20 }
 0x3c8   :  { %v1968_v63 = vmul.f32 %v1964_v62, %v1900_v51 }
 0x3c9   :  { %v1901_v8 = vpop.f32.mrf.mxu3  ;;  %1332 = vadd.xlane.f32.xlu2 %v1331_v45 }
 0x3ca   :  { %v1972_v7 = vadd.f32 %v1968_v63, %v1900_v51  ;;  %2481 = vmatpush.bf16.msrb.mxu3 %v3504_v54  ;;  %v491_v51 = vsub.f32 0.0, %v490_v46 }
 0x3cc   :  { %v1976_v15 = vmul.f32 0.7978846, %v1972_v7  ;;  %v492_v52 = vmul.f32 1.442695, %v491_v51 }
 0x3ce   :  { %3850 = vtanh.f32 %v1976_v15  ;;  %2482 = vmatpush.bf16.msrb.mxu3 %v3496_v27  ;;  %v2062_v27 = vperm.slane %v2059_v22, 1 }
 0x3d2   :  { %2483 = vmatpush.bf16.msrb.mxu3 %v3488_v55 }
 0x3d4   :  { %v3851_v16 = vpop.eup %3850 }
 0x3d5   :  { %v1984_v24 = vadd.f32 1.0, %v3851_v16 }
 0x3d7   :  { %v1988_v38 = vmul.f32 %v1984_v24, %v1956_v23  ;;  %v2395_v24 = vadd.f32 %v4243_v3, %v2061_v10 }
 0x3d9   :  { %v1951_v29 = vpop.f32.mrf.mxu3  ;;  %v2056_v41 = vpack.c.bf16 %v1988_v38, %v1988_v38 }
 0x3da   :  { %v1952_v32 = vadd.f32 %v1951_v29, %v1939_v1  ;;  %v2447_v29 = vadd.f32 %v4248_v12, %v2062_v27  ;;  %v3864_v12 = vld [vmem:[#allocation2 + $0x8] sm:$0xff] }
 0x3db   :  { %2406 = vmatmul.bf16.vlgmr.msra.gmra.mxu1 %v2056_v41 }
 0x3dc   :  { %v1962_v33 = vmul.f32 0.044715, %v1952_v32  ;;  %v1958_v39 = vmul.f32 0.5, %v1952_v32 }
 0x3de   :  { %v1966_v36 = vmul.f32 %v1962_v33, %v1952_v32 }
 0x3e0   :  { %v1970_v2 = vmul.f32 %v1966_v36, %v1952_v32 }
 0x3e1   :  { %v1953_v47 = vpop.f32.mrf.mxu3 }
 0x3e2   :  { %v1974_v34 = vadd.f32 %v1970_v2, %v1952_v32 }
 0x3e4   :  { %v1978_v37 = vmul.f32 0.7978846, %v1974_v34 }
 0x3e6   :  { %3852 = vtanh.f32 %v1978_v37 }
 0x3e7   :  { %3854 = vpow2.f32 %v492_v52 }
 0x3eb   :  { %2458 = vmatmul.bf16.vlgmr.msrb.gmra.mxu1 %v2056_v41 }
 0x3ec   :  { %v3853_v17 = vpop.eup %3852 }
 0x3ed   :  { %v1986_v40 = vadd.f32 1.0, %v3853_v17  ;;  %v3855_v42 = vpop.eup %3854 }
 0x3ee   :  { %v494_v63 = vadd.f32 1.0, %v3855_v42 }
 0x3ef   :  { %v1990_v28 = vmul.f32 %v1986_v40, %v1958_v39 }
 0x3f1   :  { %v2058_v49 = vpack.c.bf16 %v1990_v28, %v1990_v28  ;;  %v3863_v28 = vld [vmem:[#allocation2] sm:$0xff] }
 0x3f3   :  { %2432 = vmatmul.bf16.vlgmr.msra.gmra.mxu3 %v2058_v49 }
 0x3fc   :  { %v1308_v60 = vpop.xlane.xlu0 %1307 }
 0x3fd   :  { %v1309_v62 = vmul.f32 0.003921569, %v1308_v60 }
 0x403   :  { %2484 = vmatmul.bf16.vlgmr.msrb.gmra.mxu3 %v2058_v49 }
 0x40c   :  { %v1320_v59 = vpop.xlane.xlu1 %1319 }
 0x40d   :  { %v1321_v13 = vmul.f32 0.003921569, %v1320_v59 }
 0x40f   :  { %v1322_v8 = vadd.f32 %v1321_v13, %v1309_v62 }
 0x434   :  { %v1420_v56 = vpop.xlane.xlu2 %1419 }
 0x435   :  { %v1425_v35 = vadd.f32 %v3819_v48, %v1420_v56 }
 0x437   :  { %v1426_v58 = vsub.f32 0.0, %v1425_v35 }
 0x439   :  { %v1427_v5 = vmul.f32 1.442695, %v1426_v58 }
 0x43b   :  { %3856 = vpow2.f32 %v1427_v5 }
 0x43c   :  { %v1333_v61 = vpop.xlane.xlu2 %1332  ;;  %3858 = vrcp.f32 %v494_v63 }
 0x43d   :  { %v1334_v45 = vmul.f32 0.003921569, %v1333_v61 }
 0x43f   :  { %v1335_v6 = vadd.f32 %v1334_v45, %v1322_v8 }
 0x441   :  { %v3857_v4 = vpop.eup %3856  ;;  %v1336_v9 = vmul.f32 0.33333334, %v1335_v6 }
 0x442   :  { %v1429_v7 = vadd.f32 1.0, %v3857_v4  ;;  %v3859_v11 = vpop.eup %3858 }
 0x443   :  { %v1434_v14 = vsub.f32 1.0, %v1336_v9  ;;  %v1431_v18 = vmul.f32 0.4, %v3859_v11 }
 0x444   :  { %3860 = vrcp.f32 %v1429_v7 }
 0x445   :  { %v1435_v20 = vmul.f32 0.3, %v1434_v14 }
 0x44a   :  { %v3861_v15 = vpop.eup %3860 }
 0x44b   :  { %v1432_v44 = vmul.f32 0.3, %v3861_v15 }
 0x44d   :  { %v1433_v53 = vadd.f32 %v1432_v44, %v1431_v18 }
 0x44f   :  { %v1436_v21 = vadd.f32 %v1435_v20, %v1433_v53 }
 0x451   :  { %v1437_v16 = vmax.f32 %v1436_v21, 0.1 }
 0x453   :  { %v1438_v54 = vmin.f32 %v1437_v16, 0.95 }
 0x455   :  { %v2489_v23 = vmul.f32 0.1, %v1438_v54  ;;  %2510 = vst.msk [vmem:[%s4346_s9] sm:$0xff] %vm2509_vm8, %v1438_v54  ;;  %s4028_s9 = smov [#allocation11]  }
 0x456   :  { %s2516_s19 = sshll.u32 %s4028_s9, 4  ;;  %s2517_s19 = int_to_ptr.vmem [resolvable:$true] %s2516_s19 }
 0x457   :  { %2500 = vperm.xlu1 %3810, %v2489_v23   ;;  %v2490_v26 = vsub.f32 1.1, %v2489_v23 }
 0x458   :  { %v2407_v25 = vpop.f32.mrf.mxu1 }
 0x459   :  { %v2408_v38 = vadd.f32 %v2407_v25, %v2395_v24  ;;  %2493 = vperm.xlu0 %3809, %v2490_v26  }
 0x45b   :  { %v2421_v32 = vadd.f32 %v4254_v19, %v2408_v38 }
 0x460   :  { %v2409_v1 = vpop.f32.mrf.mxu1 }
 0x468   :  { %v2459_v41 = vpop.f32.mrf.mxu1 }
 0x469   :  { %v2460_v30 = vadd.f32 %v2459_v41, %v2447_v29 }
 0x46b   :  { %v2473_v2 = vadd.f32 %v4274_v50, %v2460_v30 }
 0x470   :  { %v2461_v31 = vpop.f32.mrf.mxu1 }
 0x476   :  { %v2433_v33 = vpop.f32.mrf.mxu3 }
 0x477   :  { %v2434_v55 = vadd.f32 %v2433_v33, %v2421_v32 }
 0x47e   :  { %v2435_v36 = vpop.f32.mrf.mxu3 }
 0x486   :  { %v2485_v3 = vpop.f32.mrf.mxu3 }
 0x487   :  { %v2486_v47 = vadd.f32 %v2485_v3, %v2473_v2 }
 0x48e   :  { %v2487_v34 = vpop.f32.mrf.mxu3 }
 0x4c9   :  { %v2501_v37 = vpop.permute.xlu1 %2500 }
 0x4ca   :  { %v2503_v39 = vmul.f32 %v2501_v37, %v2434_v55  ;;  %v2504_v40 = vmul.f32 %v2501_v37, %v2486_v47 }
 0x4cb   :  { %v2494_v17 = vpop.permute.xlu0 %2493 }
 0x4cc   :  { %v2496_v49 = vmul.f32 %v3863_v28, %v2494_v17  ;;  %v2497_v0 = vmul.f32 %v3864_v12, %v2494_v17 }
 0x4ce   :  { %v2505_v19 = vadd.f32 %v2503_v39, %v2496_v49  ;;  %v2506_v57 = vadd.f32 %v2504_v40, %v2497_v0 }
 0x4d0   :  { %2507 = vst [vmem:[#allocation11] sm:$0xff] %v2505_v19 }
 0x4d1   :  { %2508 = vst [vmem:[#allocation11 + $0x8] sm:$0xff] %v2506_v57 }
 0x4d2   :  { %2521 = dma.vmem_to_hbm [thread:$0]  %s2517_s19, 256, %s2519_s22, [#allocation4]  }
 0x4d3   :  { %4015 = dma.done.wait [#allocation4], 256  }
 0x4d4   :  { %4016 = vsyncadd [#allocation4], 4294967040 }
 0x4d5   :  { %2530 = vsyncpa [#allocation3], 1 }
 0x4d6   :  { %2531 = vsyncpa [#allocation6], 1 }
 0x4d7   :  { %2532 = vsyncpa [#allocation9], 1 }
 0x4d8   :  { %2533 = vsyncpa [#allocation4], 1 }

</bundles_post_ra>
